<compile_context>
chip_gen: v7x
topology: tpu7x:2x2x1
jax: 0.10.0
libtpu: 0.0.40
codegen_flags: <defaults>
</compile_context>

<pallas_src>
import functools

import numpy as np
import jax
import jax.numpy as jnp
from jax import lax
from jax.experimental import pallas as pl
from jax.experimental.pallas import tpu as pltpu

EPS = 1e-5


# --------------------------------------------------------------------------------------
# Kernels
# --------------------------------------------------------------------------------------
def _conv01_kernel(x_ref, xhalo_ref, w1_ref, y1_ref, edge_ref,
                   s0_ref, q0_ref, s1_ref, q1_ref):
    """Pass 1: conv0 (1x1) + conv1 (3x3) fused into ONE matmul, plus per-tile stats.

    x_ref     : (1, TH, W*Ci)        bf16  current row tile
    xhalo_ref : (1, 2,  W*Ci)        bf16  rows just above / below the tile (zero at edges)
    w1_ref    : (3*W*Ci, 2*W*Co)     bf16  [band1_up; band1_mid | conv0; band1_dn]
    """
    f32 = jnp.float32
    TH = x_ref.shape[1]
    LCo = y1_ref.shape[2]

    xb = x_ref[0]                              # (TH, W*Ci)
    ha = xhalo_ref[0]                          # (2,  W*Ci), zeros at the image boundary

    # Vertical neighbours of every row (sublane-shifted copies; see header note on roll).
    x_up = jnp.concatenate([ha[0:1], xb[:-1]], axis=0)     # input rows r-1
    x_dn = jnp.concatenate([xb[1:], ha[1:2]], axis=0)      # input rows r+1

    # Single fused MXU matmul: K = 3*W*Ci, N = 2*W*Co  (conv1 columns | conv0 columns).
    xcat = jnp.concatenate([x_up, xb, x_dn], axis=1)        # lane-aligned concat
    yy = jnp.dot(xcat, w1_ref[...], preferred_element_type=f32)
    y1 = yy[:, :LCo]                           # conv1(x), pre-BN, f32
    y0 = yy[:, LCo:]                           # conv0(x), pre-BN, f32 (stats only)

    y1_16 = y1.astype(y1_ref.dtype)
    y1_ref[0] = y1_16
    # Tile-boundary rows of y1 (halo for pass 2) -- replaces the XLA-side gather of y1.
    edge_ref[...] = jnp.concatenate([y1_16[0:1], y1_16[TH - 1:TH]], axis=0)[None, None]

    # Per-tile batch statistics (reduced over tiles on the host side).  No revisited
    # accumulator => both grid axes stay "parallel".
    s0_ref[...] = jnp.sum(y0, axis=0, keepdims=True)[None, None]
    q0_ref[...] = jnp.sum(y0 * y0, axis=0, keepdims=True)[None, None]
    s1_ref[...] = jnp.sum(y1, axis=0, keepdims=True)[None, None]
    q1_ref[...] = jnp.sum(y1 * y1, axis=0, keepdims=True)[None, None]


def _conv2_kernel(y1_ref, eup_ref, edn_ref, sc1_ref, sh1_ref, w2_ref,
                  y2_ref, s2_ref, q2_ref):
    """Pass 2: BN1+ReLU (bf16 prologue) fused with conv2 (3x3, single matmul) + stats."""
    f32 = jnp.float32
    h = pl.program_id(1)
    nh = pl.num_programs(1)

    sc = sc1_ref[...]                          # (1, W*Co) bf16
    sh = sh1_ref[...]

    # BN1 + ReLU prologue entirely in bf16 (bf16-native VALU on v6e/v7x).
    tb = jnp.maximum(y1_ref[0] * sc + sh, 0.0)                       # (TH, W*Co)
    t_up_row = jnp.maximum(eup_ref[0, 0, 1:2, :] * sc + sh, 0.0)     # last row of tile h-1
    t_dn_row = jnp.maximum(edn_ref[0, 0, 0:1, :] * sc + sh, 0.0)     # first row of tile h+1
    # 'same' padding acts on the post-BN activation: rows outside the image are zero.
    t_up_row = jnp.where(h > 0, t_up_row, jnp.zeros_like(t_up_row))
    t_dn_row = jnp.where(h + 1 < nh, t_dn_row, jnp.zeros_like(t_dn_row))

    t_up = jnp.concatenate([t_up_row, tb[:-1]], axis=0)
    t_dn = jnp.concatenate([tb[1:], t_dn_row], axis=0)
    tcat = jnp.concatenate([t_up, tb, t_dn], axis=1)                 # (TH, 3*W*Co)

    y2 = jnp.dot(tcat, w2_ref[...], preferred_element_type=f32)
    y2_ref[0] = y2.astype(y2_ref.dtype)

    s2_ref[...] = jnp.sum(y2, axis=0, keepdims=True)[None, None]
    q2_ref[...] = jnp.sum(y2 * y2, axis=0, keepdims=True)[None, None]


def _merge_kernel(x_ref, y2_ref, sc0_ref, sh0_ref, sc2_ref, sh2_ref, w0_ref, o_ref):
    """Pass 3: recompute the cheap 1x1 conv0 (y0 never hits HBM), BN0+ReLU, BN2+ReLU,
    residual add.  Memory-bound; output stored bf16, lane-dense."""
    f32 = jnp.float32
    y0 = jnp.dot(x_ref[0], w0_ref[...], preferred_element_type=f32)   # (TH, W*Co)
    b1 = jnp.maximum(y0 * sc0_ref[...] + sh0_ref[...], 0.0)
    b2 = jnp.maximum(y2_ref[0].astype(f32) * sc2_ref[...] + sh2_ref[...], 0.0)
    o_ref[0] = (b1 + b2).astype(o_ref.dtype)


# --------------------------------------------------------------------------------------
# Host-side glue
# --------------------------------------------------------------------------------------
def _row_halo(a, th):
    """a: (N, H, L) -> (N*(H//th), 2, L): rows just above/below each th-row tile,
    zero at the top/bottom image boundary."""
    N, H, L = a.shape
    nh = H // th
    zero = jnp.zeros((N, 1, L), a.dtype)
    above = jnp.concatenate([zero, a[:, th - 1:H - 1:th, :]], axis=1)   # (N, nh, L)
    below = jnp.concatenate([a[:, th::th, :], zero], axis=1)            # (N, nh, L)
    return jnp.stack([above, below], axis=2).reshape(N * nh, 2, L)


def _banded(w, W):
    """w: (3, 3, Cin, Cout) HWIO -> (3, W*Cin, W*Cout). band[dy] applies all three
    horizontal taps of kernel row dy on a row stored as W*Cin lanes, producing W*Cout
    lanes, with 'same' zero padding along W folded in."""
    w = np.asarray(w, np.float32)
    KH, KW, Cin, Cout = w.shape
    band = np.zeros((KH, W * Cin, W * Cout), np.float32)
    for dy in range(KH):
        for dx in range(KW):
            for wo in range(W):
                wi = wo + dx - 1
                if 0 <= wi < W:
                    band[dy, wi * Cin:(wi + 1) * Cin, wo * Cout:(wo + 1) * Cout] = w[dy, dx]
    return band


def prepare_weights(p, W):
    """One-time host-side weight re-layout (bf16).

    * conv1/conv0 fused: (3*W*Ci, 2*W*Co) -- the three kernel rows stacked along K so
      the vertical taps accumulate inside the MXU; conv0 (1x1) occupies the second half
      of the output lanes (middle row-block only).
    * conv2: the analogous (3*W*Co, W*Co) stack.
    * Conv biases are intentionally omitted: train-mode BN subtracts the batch mean,
      which cancels any constant per-channel bias exactly.
    """
    Ci, Co = np.asarray(p["w0"]).shape
    LCi, LCo = W * Ci, W * Co
    band1 = _banded(p["w1"], W)                              # (3, W*Ci, W*Co)
    band2 = _banded(p["w2"], W)                              # (3, W*Co, W*Co)
    w0d = np.kron(np.eye(W, dtype=np.float32), np.asarray(p["w0"], np.float32))

    w1big = np.zeros((3 * LCi, 2 * LCo), np.float32)
    w1big[0 * LCi:1 * LCi, :LCo] = band1[0]
    w1big[1 * LCi:2 * LCi, :LCo] = band1[1]
    w1big[2 * LCi:3 * LCi, :LCo] = band1[2]
    w1big[1 * LCi:2 * LCi, LCo:] = w0d
    w2big = np.concatenate([band2[0], band2[1], band2[2]], axis=0)   # (3*W*Co, W*Co)

    return dict(
        w1=jnp.asarray(w1big, jnp.bfloat16),
        w2=jnp.asarray(w2big, jnp.bfloat16),
        w0=jnp.asarray(w0d, jnp.bfloat16),
        g0=jnp.asarray(p["g0"]).reshape(-1), be0=jnp.asarray(p["be0"]).reshape(-1),
        g1=jnp.asarray(p["g1"]).reshape(-1), be1=jnp.asarray(p["be1"]).reshape(-1),
        g2=jnp.asarray(p["g2"]).reshape(-1), be2=jnp.asarray(p["be2"]).reshape(-1),
    )


def _bn_scale_shift(s, q, gamma, beta, count, W, Co, dtype):
    """Per-tile sum / sum-of-squares (N, nh, 1, W*Co) -> per-lane BN scale/shift."""
    s_c = s.sum(axis=(0, 1, 2)).reshape(W, Co).sum(axis=0)
    q_c = q.sum(axis=(0, 1, 2)).reshape(W, Co).sum(axis=0)
    mean = s_c / count
    var = jnp.maximum(q_c / count - mean * mean, 0.0)   # clamp: E[x^2]-E[x]^2 can dip < 0
    scale = gamma * lax.rsqrt(var + EPS)
    shift = beta - mean * scale
    return (jnp.tile(scale, W)[None].astype(dtype),
            jnp.tile(shift, W)[None].astype(dtype))


def _pick_tile_h(H, cap=256):
    """Largest row tile that divides H (whole image when it fits the cap)."""
    if H <= cap:
        return H
    for th in range(cap, 7, -1):
        if H % th == 0 and th % 8 == 0:
            return th
    return H


@functools.partial(jax.jit, static_argnames=("tile_h",))
def conv_res_block(x_nchw, wp, *, tile_h=None):
    N, Ci, H, W = x_nchw.shape
    Co = wp["g0"].shape[0]
    TH = tile_h if tile_h is not None else _pick_tile_h(H)
    assert H % TH == 0, (H, TH)
    nh = H // TH
    LCi, LCo = W * Ci, W * Co
    count = N * H * W

    # NCHW -> (N, H, W*Ci) bf16: W and channels folded into the lane dimension.
    x = jnp.transpose(x_nchw, (0, 2, 3, 1)).reshape(N, H, LCi).astype(jnp.bfloat16)
    x_halo = _row_halo(x, TH)                                       # (N*nh, 2, W*Ci)

    grid = (N, nh)
    row_ci = pl.BlockSpec((1, TH, LCi), lambda n, h: (n, h, 0))
    row_co = pl.BlockSpec((1, TH, LCo), lambda n, h: (n, h, 0))
    halo_ci = pl.BlockSpec((1, 2, LCi), lambda n, h: (n * nh + h, 0, 0))
    edge_o = pl.BlockSpec((1, 1, 2, LCo), lambda n, h: (n, h, 0, 0))
    edge_up = pl.BlockSpec((1, 1, 2, LCo),
                           lambda n, h: (n, jnp.maximum(h - 1, 0), 0, 0))
    edge_dn = pl.BlockSpec((1, 1, 2, LCo),
                           lambda n, h: (n, jnp.minimum(h + 1, nh - 1), 0, 0))
    stat = pl.BlockSpec((1, 1, 1, LCo), lambda n, h: (n, h, 0, 0))
    full = lambda a: pl.BlockSpec(a.shape, lambda n, h: (0,) * a.ndim)

    act_shape = jax.ShapeDtypeStruct((N, H, LCo), jnp.bfloat16)
    edge_shape = jax.ShapeDtypeStruct((N, nh, 2, LCo), jnp.bfloat16)
    stat_shape = jax.ShapeDtypeStruct((N, nh, 1, LCo), jnp.float32)

    # Per-tile outputs only => both grid axes are fully parallel (v7x megacore sharding).
    cp = pltpu.CompilerParams(dimension_semantics=("parallel", "parallel"),
                              vmem_limit_bytes=32 * 1024 * 1024)
    # TODO(synk): for large W on v7x (64 MiB VMEM) stage the constant banded weights
    # single-buffered (pipeline_mode) or via scratch DMA, and tile the W axis.

    # ---- pass 1: conv0 (1x1) + conv1 (3x3) in one matmul, pre-BN, + statistics -------
    ce1 = pl.CostEstimate(
        flops=2 * N * H * (3 * LCi) * (2 * LCo), transcendentals=0,
        bytes_accessed=2 * (N * H * (LCi + LCo) + N * nh * 2 * (LCi + LCo)
                            + 3 * LCi * 2 * LCo) + 16 * N * nh * LCo)
    y1, edges1, s0, q0, s1, q1 = pl.pallas_call(
        _conv01_kernel,
        grid=grid,
        in_specs=[row_ci, halo_ci, full(wp["w1"])],
        out_specs=(row_co, edge_o, stat, stat, stat, stat),
        out_shape=(act_shape, edge_shape, stat_shape, stat_shape, stat_shape, stat_shape),
        compiler_params=cp,
        cost_estimate=ce1,
    )(x, x_halo, wp["w1"])

    sc0, sh0 = _bn_scale_shift(s0, q0, wp["g0"], wp["be0"], count, W, Co, jnp.float32)
    sc1, sh1 = _bn_scale_shift(s1, q1, wp["g1"], wp["be1"], count, W, Co, jnp.bfloat16)

    # ---- pass 2: BN1+ReLU (bf16) fused with conv2 (3x3), pre-BN, + statistics --------
    ce2 = pl.CostEstimate(
        flops=2 * N * H * (3 * LCo) * LCo, transcendentals=0,
        bytes_accessed=2 * (2 * N * H * LCo + 4 * N * nh * LCo + 2 * LCo
                            + 3 * LCo * LCo) + 8 * N * nh * LCo)
    y2, s2, q2 = pl.pallas_call(
        _conv2_kernel,
        grid=grid,
        in_specs=[row_co, edge_up, edge_dn, full(sc1), full(sh1), full(wp["w2"])],
        out_specs=(row_co, stat, stat),
        out_shape=(act_shape, stat_shape, stat_shape),
        compiler_params=cp,
        cost_estimate=ce2,
    )(y1, edges1, edges1, sc1, sh1, wp["w2"])

    sc2, sh2 = _bn_scale_shift(s2, q2, wp["g2"], wp["be2"], count, W, Co, jnp.float32)

    # ---- pass 3: recompute conv0, BN0+ReLU, BN2+ReLU, residual add --------------------
    ce3 = pl.CostEstimate(
        flops=2 * N * H * LCi * LCo, transcendentals=0,
        bytes_accessed=2 * (N * H * (LCi + 2 * LCo) + LCi * LCo) + 16 * LCo)
    out = pl.pallas_call(
        _merge_kernel,
        grid=grid,
        in_specs=[row_ci, row_co, full(sc0), full(sh0), full(sc2), full(sh2),
                  full(wp["w0"])],
        out_specs=row_co,
        out_shape=jax.ShapeDtypeStruct((N, H, LCo), jnp.bfloat16),
        compiler_params=cp,
        cost_estimate=ce3,
    )(x, y2, sc0, sh0, sc2, sh2, wp["w0"])

    # bf16 NHWC out of the kernel; the only f32 tensor hitting HBM is the final NCHW
    # result produced by this fused transpose + cast.
    return jnp.transpose(out.reshape(N, H, W, Co), (0, 3, 1, 2)).astype(jnp.float32)


# --------------------------------------------------------------------------------------
# Parameters + pure-JAX reference
# --------------------------------------------------------------------------------------
def init_params(key, ci, co):
    ks = jax.random.split(key, 12)
    return dict(
        w0=jax.random.normal(ks[0], (ci, co), jnp.float32) * 0.2,          # 1x1 conv
        w1=jax.random.normal(ks[1], (3, 3, ci, co), jnp.float32) * 0.2,    # HWIO
        w2=jax.random.normal(ks[2], (3, 3, co, co), jnp.float32) * 0.1,    # HWIO
        b0=jax.random.normal(ks[3], (co,), jnp.float32) * 0.1,
        b1=jax.random.normal(ks[4], (co,), jnp.float32) * 0.1,
        b2=jax.random.normal(ks[5], (co,), jnp.float32) * 0.1,
        g0=1.0 + 0.1 * jax.random.normal(ks[6], (co,), jnp.float32),
        g1=1.0 + 0.1 * jax.random.normal(ks[7], (co,), jnp.float32),
        g2=1.0 + 0.1 * jax.random.normal(ks[8], (co,), jnp.float32),
        be0=0.1 * jax.random.normal(ks[9], (co,), jnp.float32),
        be1=0.1 * jax.random.normal(ks[10], (co,), jnp.float32),
        be2=0.1 * jax.random.normal(ks[11], (co,), jnp.float32),
    )


def ref_forward(x_nchw, p):
    """f32 reference reproducing the PyTorch forward (train-mode BN, conv biases kept —
    they are cancelled by the BN mean subtraction, which the kernels exploit)."""
    x = jnp.transpose(x_nchw, (0, 2, 3, 1)).astype(jnp.float32)

    def conv(a, w):
        return lax.conv_general_dilated(
            a, w, (1, 1), "SAME", dimension_numbers=("NHWC", "HWIO", "NHWC"),
            precision=lax.Precision.HIGHEST)

    def bn_relu(y, g, b):
        m = y.mean(axis=(0, 1, 2), keepdims=True)
        v = ((y - m) ** 2).mean(axis=(0, 1, 2), keepdims=True)
        return jax.nn.relu((y - m) * lax.rsqrt(v + EPS) * g.reshape(1, 1, 1, -1)
                           + b.reshape(1, 1, 1, -1))

    ci, co = p["w0"].shape
    br1 = bn_relu(conv(x, p["w0"].reshape(1, 1, ci, co)) + p["b0"], p["g0"], p["be0"])
    br2 = bn_relu(conv(x, p["w1"]) + p["b1"], p["g1"], p["be1"])
    br2 = bn_relu(conv(br2, p["w2"]) + p["b2"], p["g2"], p["be2"])
    return jnp.transpose(br1 + br2, (0, 3, 1, 2))


if __name__ == "__main__":
    key = jax.random.PRNGKey(0)
    kx, kp = jax.random.split(key)

    N, Ci, H, W = 2, 4, 32, 32
    Co = 8
    x = jax.random.normal(kx, (N, Ci, H, W), jnp.float32)
    params = init_params(kp, Ci, Co)
    wp = prepare_weights(params, W)

    out = jax.block_until_ready(conv_res_block(x, wp))
    ref = jax.block_until_ready(ref_forward(x, params))

    assert out.shape == (N, Co, H, W), out.shape
    err = jnp.abs(out - ref)
    max_err = float(jnp.max(err))
    mean_err = float(jnp.mean(err))
    # End-to-end bf16 (MXU operands, HBM-resident activations, bf16 BN1 prologue and
    # bf16 final store) against a pure-f32 reference.
    assert max_err < 1e-1 and mean_err < 2e-2, (max_err, mean_err)

    # TODO(synk): PyTorch train-mode BN also updates running_mean/running_var buffers as a
    # side effect; that bookkeeping is not part of the returned tensor and is not modeled.
    print("KERNEL_OK")
</pallas_src>

<mosaic_0001>
module attributes {stable_mosaic.version = 11 : i64} {
  func.func @_conv01_kernel(%arg0: i32, %arg1: i32, %arg2: memref<1x32x128xbf16, #tpu.memory_space<vmem>>, %arg3: memref<1x2x128xbf16, #tpu.memory_space<vmem>>, %arg4: memref<384x512xbf16, #tpu.memory_space<vmem>>, %arg5: memref<1x32x256xbf16, #tpu.memory_space<vmem>>, %arg6: memref<1x1x2x256xbf16, #tpu.memory_space<vmem>>, %arg7: memref<1x1x1x256xf32, #tpu.memory_space<vmem>>, %arg8: memref<1x1x1x256xf32, #tpu.memory_space<vmem>>, %arg9: memref<1x1x1x256xf32, #tpu.memory_space<vmem>>, %arg10: memref<1x1x1x256xf32, #tpu.memory_space<vmem>>) attributes {dimension_semantics = [#tpu.dimension_semantics<parallel>, #tpu.dimension_semantics<parallel>], iteration_bounds = array<i64: 2, 1>, scalar_prefetch = 0 : i64, scratch_operands = 0 : i64, tpu.core_type = #tpu.core_type<tc>, window_params = [{transform_indices = @transform_0, window_bounds = array<i64: 1, 32, 128>}, {transform_indices = @transform_1, window_bounds = array<i64: 1, 2, 128>}, {pipeline_mode = #tpu.pipeline_mode<synchronous>, transform_indices = @transform_2, window_bounds = array<i64: 384, 512>}, {transform_indices = @transform_3, window_bounds = array<i64: 1, 32, 256>}, {transform_indices = @transform_4, window_bounds = array<i64: 1, 1, 2, 256>}, {transform_indices = @transform_5, window_bounds = array<i64: 1, 1, 1, 256>}, {transform_indices = @transform_6, window_bounds = array<i64: 1, 1, 1, 256>}, {transform_indices = @transform_7, window_bounds = array<i64: 1, 1, 1, 256>}, {transform_indices = @transform_8, window_bounds = array<i64: 1, 1, 1, 256>}]} {
    %c0 = arith.constant 0 : index
    %c0_0 = arith.constant 0 : index
    %c0_1 = arith.constant 0 : index
    %0 = vector.load %arg2[%c0, %c0_0, %c0_1] : memref<1x32x128xbf16, #tpu.memory_space<vmem>>, vector<1x32x128xbf16>
    %1 = vector.shape_cast %0 : vector<1x32x128xbf16> to vector<32x128xbf16>
    %c0_2 = arith.constant 0 : index
    %c0_3 = arith.constant 0 : index
    %c0_4 = arith.constant 0 : index
    %2 = vector.load %arg3[%c0_2, %c0_3, %c0_4] : memref<1x2x128xbf16, #tpu.memory_space<vmem>>, vector<1x2x128xbf16>
    %3 = vector.shape_cast %2 : vector<1x2x128xbf16> to vector<2x128xbf16>
    %4 = vector.extract_strided_slice %3 {offsets = [0, 0], sizes = [1, 128], strides = [1, 1]} : vector<2x128xbf16> to vector<1x128xbf16>
    %5 = vector.extract_strided_slice %1 {offsets = [0, 0], sizes = [31, 128], strides = [1, 1]} : vector<32x128xbf16> to vector<31x128xbf16>
    %6 = tpu.concatenate %4, %5 in 0 : vector<1x128xbf16>, vector<31x128xbf16> -> vector<32x128xbf16>
    %7 = vector.extract_strided_slice %1 {offsets = [1, 0], sizes = [31, 128], strides = [1, 1]} : vector<32x128xbf16> to vector<31x128xbf16>
    %8 = vector.extract_strided_slice %3 {offsets = [1, 0], sizes = [1, 128], strides = [1, 1]} : vector<2x128xbf16> to vector<1x128xbf16>
    %9 = tpu.concatenate %7, %8 in 0 : vector<31x128xbf16>, vector<1x128xbf16> -> vector<32x128xbf16>
    %10 = tpu.concatenate %6, %1, %9 in 1 : vector<32x128xbf16>, vector<32x128xbf16>, vector<32x128xbf16> -> vector<32x384xbf16>
    %c0_5 = arith.constant 0 : index
    %c0_6 = arith.constant 0 : index
    %11 = vector.load %arg4[%c0_5, %c0_6] : memref<384x512xbf16, #tpu.memory_space<vmem>>, vector<384x512xbf16>
    %cst = arith.constant dense<0.000000e+00> : vector<32x512xf32>
    %12 = tpu.matmul %10, %11, %cst {dimension_numbers = #tpu.dot_dimension_numbers<[1], [0], [0], [1], [0, 0, 1, 1], [], []>} : vector<32x384xbf16>, vector<384x512xbf16>, vector<32x512xf32> -> vector<32x512xf32>
    %13 = vector.extract_strided_slice %12 {offsets = [0, 0], sizes = [32, 256], strides = [1, 1]} : vector<32x512xf32> to vector<32x256xf32>
    %14 = vector.extract_strided_slice %12 {offsets = [0, 256], sizes = [32, 256], strides = [1, 1]} : vector<32x512xf32> to vector<32x256xf32>
    %15 = arith.truncf %13 : vector<32x256xf32> to vector<32x256xbf16>
    %c0_7 = arith.constant 0 : index
    %c0_8 = arith.constant 0 : index
    %c0_9 = arith.constant 0 : index
    %16 = vector.load %arg5[%c0_7, %c0_8, %c0_9] : memref<1x32x256xbf16, #tpu.memory_space<vmem>>, vector<1x32x256xbf16>
    %17 = vector.shape_cast %16 : vector<1x32x256xbf16> to vector<32x256xbf16>
    %18 = vector.shape_cast %15 : vector<32x256xbf16> to vector<1x32x256xbf16>
    tpu.vector_store %arg5[%c0_7, %c0_8, %c0_9], %18 {strides = array<i32>} : memref<1x32x256xbf16, #tpu.memory_space<vmem>>, vector<1x32x256xbf16>,
    %19 = vector.extract_strided_slice %15 {offsets = [0, 0], sizes = [1, 256], strides = [1, 1]} : vector<32x256xbf16> to vector<1x256xbf16>
    %20 = vector.extract_strided_slice %15 {offsets = [31, 0], sizes = [1, 256], strides = [1, 1]} : vector<32x256xbf16> to vector<1x256xbf16>
    %21 = tpu.concatenate %19, %20 in 0 : vector<1x256xbf16>, vector<1x256xbf16> -> vector<2x256xbf16>
    %22 = vector.shape_cast %21 : vector<2x256xbf16> to vector<1x1x2x256xbf16>
    %c0_10 = arith.constant 0 : index
    %c0_11 = arith.constant 0 : index
    %c0_12 = arith.constant 0 : index
    %c0_13 = arith.constant 0 : index
    %23 = vector.load %arg6[%c0_10, %c0_11, %c0_12, %c0_13] : memref<1x1x2x256xbf16, #tpu.memory_space<vmem>>, vector<1x1x2x256xbf16>
    tpu.vector_store %arg6[%c0_10, %c0_11, %c0_12, %c0_13], %22 {strides = array<i32>} : memref<1x1x2x256xbf16, #tpu.memory_space<vmem>>, vector<1x1x2x256xbf16>,
    %cst_14 = arith.constant dense<0.000000e+00> : vector<256xf32>
    %24 = vector.multi_reduction <add>, %14, %cst_14 [0] : vector<32x256xf32> to vector<256xf32>
    %25 = vector.shape_cast %24 : vector<256xf32> to vector<1x256xf32>
    %26 = vector.shape_cast %25 : vector<1x256xf32> to vector<1x1x1x256xf32>
    %c0_15 = arith.constant 0 : index
    %c0_16 = arith.constant 0 : index
    %c0_17 = arith.constant 0 : index
    %c0_18 = arith.constant 0 : index
    %27 = vector.load %arg7[%c0_15, %c0_16, %c0_17, %c0_18] : memref<1x1x1x256xf32, #tpu.memory_space<vmem>>, vector<1x1x1x256xf32>
    tpu.vector_store %arg7[%c0_15, %c0_16, %c0_17, %c0_18], %26 {strides = array<i32>} : memref<1x1x1x256xf32, #tpu.memory_space<vmem>>, vector<1x1x1x256xf32>,
    %28 = arith.mulf %14, %14 : vector<32x256xf32>
    %cst_19 = arith.constant dense<0.000000e+00> : vector<256xf32>
    %29 = vector.multi_reduction <add>, %28, %cst_19 [0] : vector<32x256xf32> to vector<256xf32>
    %30 = vector.shape_cast %29 : vector<256xf32> to vector<1x256xf32>
    %31 = vector.shape_cast %30 : vector<1x256xf32> to vector<1x1x1x256xf32>
    %c0_20 = arith.constant 0 : index
    %c0_21 = arith.constant 0 : index
    %c0_22 = arith.constant 0 : index
    %c0_23 = arith.constant 0 : index
    %32 = vector.load %arg8[%c0_20, %c0_21, %c0_22, %c0_23] : memref<1x1x1x256xf32, #tpu.memory_space<vmem>>, vector<1x1x1x256xf32>
    tpu.vector_store %arg8[%c0_20, %c0_21, %c0_22, %c0_23], %31 {strides = array<i32>} : memref<1x1x1x256xf32, #tpu.memory_space<vmem>>, vector<1x1x1x256xf32>,
    %cst_24 = arith.constant dense<0.000000e+00> : vector<256xf32>
    %33 = vector.multi_reduction <add>, %13, %cst_24 [0] : vector<32x256xf32> to vector<256xf32>
    %34 = vector.shape_cast %33 : vector<256xf32> to vector<1x256xf32>
    %35 = vector.shape_cast %34 : vector<1x256xf32> to vector<1x1x1x256xf32>
    %c0_25 = arith.constant 0 : index
    %c0_26 = arith.constant 0 : index
    %c0_27 = arith.constant 0 : index
    %c0_28 = arith.constant 0 : index
    %36 = vector.load %arg9[%c0_25, %c0_26, %c0_27, %c0_28] : memref<1x1x1x256xf32, #tpu.memory_space<vmem>>, vector<1x1x1x256xf32>
    tpu.vector_store %arg9[%c0_25, %c0_26, %c0_27, %c0_28], %35 {strides = array<i32>} : memref<1x1x1x256xf32, #tpu.memory_space<vmem>>, vector<1x1x1x256xf32>,
    %37 = arith.mulf %13, %13 : vector<32x256xf32>
    %cst_29 = arith.constant dense<0.000000e+00> : vector<256xf32>
    %38 = vector.multi_reduction <add>, %37, %cst_29 [0] : vector<32x256xf32> to vector<256xf32>
    %39 = vector.shape_cast %38 : vector<256xf32> to vector<1x256xf32>
    %40 = vector.shape_cast %39 : vector<1x256xf32> to vector<1x1x1x256xf32>
    %c0_30 = arith.constant 0 : index
    %c0_31 = arith.constant 0 : index
    %c0_32 = arith.constant 0 : index
    %c0_33 = arith.constant 0 : index
    %41 = vector.load %arg10[%c0_30, %c0_31, %c0_32, %c0_33] : memref<1x1x1x256xf32, #tpu.memory_space<vmem>>, vector<1x1x1x256xf32>
    tpu.vector_store %arg10[%c0_30, %c0_31, %c0_32, %c0_33], %40 {strides = array<i32>} : memref<1x1x1x256xf32, #tpu.memory_space<vmem>>, vector<1x1x1x256xf32>,
    return
  }
  func.func @transform_0(%arg0: i32, %arg1: i32) -> (i32, i32, i32) {
    %c0_i32 = arith.constant 0 : i32
    %c0_i32_0 = arith.constant 0 : i32
    return %arg0, %arg1, %c0_i32 : i32, i32, i32
  }
  func.func @transform_1(%arg0: i32, %arg1: i32) -> (i32, i32, i32) {
    %c1_i32 = arith.constant 1 : i32
    %0 = arith.muli %arg0, %c1_i32 : i32
    %1 = arith.addi %0, %arg1 : i32
    %c0_i32 = arith.constant 0 : i32
    %c0_i32_0 = arith.constant 0 : i32
    %c0_i32_1 = arith.constant 0 : i32
    return %1, %c0_i32, %c0_i32_0 : i32, i32, i32
  }
  func.func @transform_2(%arg0: i32, %arg1: i32) -> (i32, i32) {
    %c0_i32 = arith.constant 0 : i32
    %c0_i32_0 = arith.constant 0 : i32
    %c0_i32_1 = arith.constant 0 : i32
    return %c0_i32, %c0_i32_0 : i32, i32
  }
  func.func @transform_3(%arg0: i32, %arg1: i32) -> (i32, i32, i32) {
    %c0_i32 = arith.constant 0 : i32
    %c0_i32_0 = arith.constant 0 : i32
    return %arg0, %arg1, %c0_i32 : i32, i32, i32
  }
  func.func @transform_4(%arg0: i32, %arg1: i32) -> (i32, i32, i32, i32) {
    %c0_i32 = arith.constant 0 : i32
    %c0_i32_0 = arith.constant 0 : i32
    %c0_i32_1 = arith.constant 0 : i32
    return %arg0, %arg1, %c0_i32, %c0_i32_0 : i32, i32, i32, i32
  }
  func.func @transform_5(%arg0: i32, %arg1: i32) -> (i32, i32, i32, i32) {
    %c0_i32 = arith.constant 0 : i32
    %c0_i32_0 = arith.constant 0 : i32
    %c0_i32_1 = arith.constant 0 : i32
    return %arg0, %arg1, %c0_i32, %c0_i32_0 : i32, i32, i32, i32
  }
  func.func @transform_6(%arg0: i32, %arg1: i32) -> (i32, i32, i32, i32) {
    %c0_i32 = arith.constant 0 : i32
    %c0_i32_0 = arith.constant 0 : i32
    %c0_i32_1 = arith.constant 0 : i32
    return %arg0, %arg1, %c0_i32, %c0_i32_0 : i32, i32, i32, i32
  }
  func.func @transform_7(%arg0: i32, %arg1: i32) -> (i32, i32, i32, i32) {
    %c0_i32 = arith.constant 0 : i32
    %c0_i32_0 = arith.constant 0 : i32
    %c0_i32_1 = arith.constant 0 : i32
    return %arg0, %arg1, %c0_i32, %c0_i32_0 : i32, i32, i32, i32
  }
  func.func @transform_8(%arg0: i32, %arg1: i32) -> (i32, i32, i32, i32) {
    %c0_i32 = arith.constant 0 : i32
    %c0_i32_0 = arith.constant 0 : i32
    %c0_i32_1 = arith.constant 0 : i32
    return %arg0, %arg1, %c0_i32, %c0_i32_0 : i32, i32, i32, i32
  }
}

module attributes {stable_mosaic.version = 11 : i64} {
  func.func @_conv2_kernel(%arg0: i32, %arg1: i32, %arg2: memref<1x32x256xbf16, #tpu.memory_space<vmem>>, %arg3: memref<1x1x2x256xbf16, #tpu.memory_space<vmem>>, %arg4: memref<1x1x2x256xbf16, #tpu.memory_space<vmem>>, %arg5: memref<1x256xbf16, #tpu.memory_space<vmem>>, %arg6: memref<1x256xbf16, #tpu.memory_space<vmem>>, %arg7: memref<768x256xbf16, #tpu.memory_space<vmem>>, %arg8: memref<1x32x256xbf16, #tpu.memory_space<vmem>>, %arg9: memref<1x1x1x256xf32, #tpu.memory_space<vmem>>, %arg10: memref<1x1x1x256xf32, #tpu.memory_space<vmem>>) attributes {dimension_semantics = [#tpu.dimension_semantics<parallel>, #tpu.dimension_semantics<parallel>], iteration_bounds = array<i64: 2, 1>, scalar_prefetch = 0 : i64, scratch_operands = 0 : i64, tpu.core_type = #tpu.core_type<tc>, window_params = [{transform_indices = @transform_0, window_bounds = array<i64: 1, 32, 256>}, {transform_indices = @transform_1, window_bounds = array<i64: 1, 1, 2, 256>}, {transform_indices = @transform_2, window_bounds = array<i64: 1, 1, 2, 256>}, {pipeline_mode = #tpu.pipeline_mode<synchronous>, transform_indices = @transform_3, window_bounds = array<i64: 1, 256>}, {pipeline_mode = #tpu.pipeline_mode<synchronous>, transform_indices = @transform_4, window_bounds = array<i64: 1, 256>}, {pipeline_mode = #tpu.pipeline_mode<synchronous>, transform_indices = @transform_5, window_bounds = array<i64: 768, 256>}, {transform_indices = @transform_6, window_bounds = array<i64: 1, 32, 256>}, {transform_indices = @transform_7, window_bounds = array<i64: 1, 1, 1, 256>}, {transform_indices = @transform_8, window_bounds = array<i64: 1, 1, 1, 256>}]} {
    %c0 = arith.constant 0 : index
    %c0_0 = arith.constant 0 : index
    %0 = vector.load %arg5[%c0, %c0_0] : memref<1x256xbf16, #tpu.memory_space<vmem>>, vector<1x256xbf16>
    %c0_1 = arith.constant 0 : index
    %c0_2 = arith.constant 0 : index
    %1 = vector.load %arg6[%c0_1, %c0_2] : memref<1x256xbf16, #tpu.memory_space<vmem>>, vector<1x256xbf16>
    %c0_3 = arith.constant 0 : index
    %c0_4 = arith.constant 0 : index
    %c0_5 = arith.constant 0 : index
    %2 = vector.load %arg2[%c0_3, %c0_4, %c0_5] : memref<1x32x256xbf16, #tpu.memory_space<vmem>>, vector<1x32x256xbf16>
    %3 = vector.shape_cast %2 : vector<1x32x256xbf16> to vector<32x256xbf16>
    %4 = vector.broadcast %0 : vector<1x256xbf16> to vector<32x256xbf16>
    %5 = arith.mulf %3, %4 : vector<32x256xbf16>
    %6 = vector.broadcast %1 : vector<1x256xbf16> to vector<32x256xbf16>
    %7 = arith.addf %5, %6 : vector<32x256xbf16>
    %cst = arith.constant 0.000000e+00 : bf16
    %8 = vector.broadcast %cst : bf16 to vector<32x256xbf16>
    %9 = arith.maximumf %7, %8 : vector<32x256xbf16>
    %c0_6 = arith.constant 0 : index
    %c0_7 = arith.constant 0 : index
    %c1 = arith.constant 1 : index
    %c0_8 = arith.constant 0 : index
    %10 = vector.load %arg3[%c0_6, %c0_7, %c1, %c0_8] : memref<1x1x2x256xbf16, #tpu.memory_space<vmem>>, vector<1x1x1x256xbf16>
    %11 = vector.shape_cast %10 : vector<1x1x1x256xbf16> to vector<1x256xbf16>
    %12 = arith.mulf %11, %0 : vector<1x256xbf16>
    %13 = arith.addf %12, %1 : vector<1x256xbf16>
    %cst_9 = arith.constant 0.000000e+00 : bf16
    %14 = vector.broadcast %cst_9 : bf16 to vector<1x256xbf16>
    %15 = arith.maximumf %13, %14 : vector<1x256xbf16>
    %c0_10 = arith.constant 0 : index
    %c0_11 = arith.constant 0 : index
    %c0_12 = arith.constant 0 : index
    %c0_13 = arith.constant 0 : index
    %16 = vector.load %arg4[%c0_10, %c0_11, %c0_12, %c0_13] : memref<1x1x2x256xbf16, #tpu.memory_space<vmem>>, vector<1x1x1x256xbf16>
    %17 = vector.shape_cast %16 : vector<1x1x1x256xbf16> to vector<1x256xbf16>
    %18 = arith.mulf %17, %0 : vector<1x256xbf16>
    %19 = arith.addf %18, %1 : vector<1x256xbf16>
    %cst_14 = arith.constant 0.000000e+00 : bf16
    %20 = vector.broadcast %cst_14 : bf16 to vector<1x256xbf16>
    %21 = arith.maximumf %19, %20 : vector<1x256xbf16>
    %c0_i32 = arith.constant 0 : i32
    %22 = arith.cmpi sgt, %arg1, %c0_i32 : i32
    %cst_15 = arith.constant 0.000000e+00 : bf16
    %23 = vector.broadcast %cst_15 : bf16 to vector<1x256xbf16>
    %24 = arith.select %22, %15, %23 : vector<1x256xbf16>
    %c1_i32 = arith.constant 1 : i32
    %25 = arith.addi %arg1, %c1_i32 : i32
    %c1_i32_16 = arith.constant 1 : i32
    %26 = arith.cmpi slt, %25, %c1_i32_16 : i32
    %cst_17 = arith.constant 0.000000e+00 : bf16
    %27 = vector.broadcast %cst_17 : bf16 to vector<1x256xbf16>
    %28 = arith.select %26, %21, %27 : vector<1x256xbf16>
    %29 = vector.extract_strided_slice %9 {offsets = [0, 0], sizes = [31, 256], strides = [1, 1]} : vector<32x256xbf16> to vector<31x256xbf16>
    %30 = tpu.concatenate %24, %29 in 0 : vector<1x256xbf16>, vector<31x256xbf16> -> vector<32x256xbf16>
    %31 = vector.extract_strided_slice %9 {offsets = [1, 0], sizes = [31, 256], strides = [1, 1]} : vector<32x256xbf16> to vector<31x256xbf16>
    %32 = tpu.concatenate %31, %28 in 0 : vector<31x256xbf16>, vector<1x256xbf16> -> vector<32x256xbf16>
    %33 = tpu.concatenate %30, %9, %32 in 1 : vector<32x256xbf16>, vector<32x256xbf16>, vector<32x256xbf16> -> vector<32x768xbf16>
    %c0_18 = arith.constant 0 : index
    %c0_19 = arith.constant 0 : index
    %34 = vector.load %arg7[%c0_18, %c0_19] : memref<768x256xbf16, #tpu.memory_space<vmem>>, vector<768x256xbf16>
    %cst_20 = arith.constant dense<0.000000e+00> : vector<32x256xf32>
    %35 = tpu.matmul %33, %34, %cst_20 {dimension_numbers = #tpu.dot_dimension_numbers<[1], [0], [0], [1], [0, 0, 1, 1], [], []>} : vector<32x768xbf16>, vector<768x256xbf16>, vector<32x256xf32> -> vector<32x256xf32>
    %36 = arith.truncf %35 : vector<32x256xf32> to vector<32x256xbf16>
    %c0_21 = arith.constant 0 : index
    %c0_22 = arith.constant 0 : index
    %c0_23 = arith.constant 0 : index
    %37 = vector.load %arg8[%c0_21, %c0_22, %c0_23] : memref<1x32x256xbf16, #tpu.memory_space<vmem>>, vector<1x32x256xbf16>
    %38 = vector.shape_cast %37 : vector<1x32x256xbf16> to vector<32x256xbf16>
    %39 = vector.shape_cast %36 : vector<32x256xbf16> to vector<1x32x256xbf16>
    tpu.vector_store %arg8[%c0_21, %c0_22, %c0_23], %39 {strides = array<i32>} : memref<1x32x256xbf16, #tpu.memory_space<vmem>>, vector<1x32x256xbf16>,
    %cst_24 = arith.constant dense<0.000000e+00> : vector<256xf32>
    %40 = vector.multi_reduction <add>, %35, %cst_24 [0] : vector<32x256xf32> to vector<256xf32>
    %41 = vector.shape_cast %40 : vector<256xf32> to vector<1x256xf32>
    %42 = vector.shape_cast %41 : vector<1x256xf32> to vector<1x1x1x256xf32>
    %c0_25 = arith.constant 0 : index
    %c0_26 = arith.constant 0 : index
    %c0_27 = arith.constant 0 : index
    %c0_28 = arith.constant 0 : index
    %43 = vector.load %arg9[%c0_25, %c0_26, %c0_27, %c0_28] : memref<1x1x1x256xf32, #tpu.memory_space<vmem>>, vector<1x1x1x256xf32>
    tpu.vector_store %arg9[%c0_25, %c0_26, %c0_27, %c0_28], %42 {strides = array<i32>} : memref<1x1x1x256xf32, #tpu.memory_space<vmem>>, vector<1x1x1x256xf32>,
    %44 = arith.mulf %35, %35 : vector<32x256xf32>
    %cst_29 = arith.constant dense<0.000000e+00> : vector<256xf32>
    %45 = vector.multi_reduction <add>, %44, %cst_29 [0] : vector<32x256xf32> to vector<256xf32>
    %46 = vector.shape_cast %45 : vector<256xf32> to vector<1x256xf32>
    %47 = vector.shape_cast %46 : vector<1x256xf32> to vector<1x1x1x256xf32>
    %c0_30 = arith.constant 0 : index
    %c0_31 = arith.constant 0 : index
    %c0_32 = arith.constant 0 : index
    %c0_33 = arith.constant 0 : index
    %48 = vector.load %arg10[%c0_30, %c0_31, %c0_32, %c0_33] : memref<1x1x1x256xf32, #tpu.memory_space<vmem>>, vector<1x1x1x256xf32>
    tpu.vector_store %arg10[%c0_30, %c0_31, %c0_32, %c0_33], %47 {strides = array<i32>} : memref<1x1x1x256xf32, #tpu.memory_space<vmem>>, vector<1x1x1x256xf32>,
    return
  }
  func.func @transform_0(%arg0: i32, %arg1: i32) -> (i32, i32, i32) {
    %c0_i32 = arith.constant 0 : i32
    %c0_i32_0 = arith.constant 0 : i32
    return %arg0, %arg1, %c0_i32 : i32, i32, i32
  }
  func.func @transform_1(%arg0: i32, %arg1: i32) -> (i32, i32, i32, i32) {
    %c1_i32 = arith.constant 1 : i32
    %0 = arith.subi %arg1, %c1_i32 : i32
    %c0_i32 = arith.constant 0 : i32
    %1 = arith.maxsi %0, %c0_i32 : i32
    %c0_i32_0 = arith.constant 0 : i32
    %c0_i32_1 = arith.constant 0 : i32
    %c0_i32_2 = arith.constant 0 : i32
    return %arg0, %1, %c0_i32_0, %c0_i32_1 : i32, i32, i32, i32
  }
  func.func @transform_2(%arg0: i32, %arg1: i32) -> (i32, i32, i32, i32) {
    %c1_i32 = arith.constant 1 : i32
    %0 = arith.addi %arg1, %c1_i32 : i32
    %c0_i32 = arith.constant 0 : i32
    %1 = arith.minsi %0, %c0_i32 : i32
    %c0_i32_0 = arith.constant 0 : i32
    %c0_i32_1 = arith.constant 0 : i32
    %c0_i32_2 = arith.constant 0 : i32
    return %arg0, %1, %c0_i32_0, %c0_i32_1 : i32, i32, i32, i32
  }
  func.func @transform_3(%arg0: i32, %arg1: i32) -> (i32, i32) {
    %c0_i32 = arith.constant 0 : i32
    %c0_i32_0 = arith.constant 0 : i32
    %c0_i32_1 = arith.constant 0 : i32
    return %c0_i32, %c0_i32_0 : i32, i32
  }
  func.func @transform_4(%arg0: i32, %arg1: i32) -> (i32, i32) {
    %c0_i32 = arith.constant 0 : i32
    %c0_i32_0 = arith.constant 0 : i32
    %c0_i32_1 = arith.constant 0 : i32
    return %c0_i32, %c0_i32_0 : i32, i32
  }
  func.func @transform_5(%arg0: i32, %arg1: i32) -> (i32, i32) {
    %c0_i32 = arith.constant 0 : i32
    %c0_i32_0 = arith.constant 0 : i32
    %c0_i32_1 = arith.constant 0 : i32
    return %c0_i32, %c0_i32_0 : i32, i32
  }
  func.func @transform_6(%arg0: i32, %arg1: i32) -> (i32, i32, i32) {
    %c0_i32 = arith.constant 0 : i32
    %c0_i32_0 = arith.constant 0 : i32
    return %arg0, %arg1, %c0_i32 : i32, i32, i32
  }
  func.func @transform_7(%arg0: i32, %arg1: i32) -> (i32, i32, i32, i32) {
    %c0_i32 = arith.constant 0 : i32
    %c0_i32_0 = arith.constant 0 : i32
    %c0_i32_1 = arith.constant 0 : i32
    return %arg0, %arg1, %c0_i32, %c0_i32_0 : i32, i32, i32, i32
  }
  func.func @transform_8(%arg0: i32, %arg1: i32) -> (i32, i32, i32, i32) {
    %c0_i32 = arith.constant 0 : i32
    %c0_i32_0 = arith.constant 0 : i32
    %c0_i32_1 = arith.constant 0 : i32
    return %arg0, %arg1, %c0_i32, %c0_i32_0 : i32, i32, i32, i32
  }
}

module attributes {stable_mosaic.version = 11 : i64} {
  func.func @_merge_kernel(%arg0: i32, %arg1: i32, %arg2: memref<1x32x128xbf16, #tpu.memory_space<vmem>>, %arg3: memref<1x32x256xbf16, #tpu.memory_space<vmem>>, %arg4: memref<1x256xf32, #tpu.memory_space<vmem>>, %arg5: memref<1x256xf32, #tpu.memory_space<vmem>>, %arg6: memref<1x256xf32, #tpu.memory_space<vmem>>, %arg7: memref<1x256xf32, #tpu.memory_space<vmem>>, %arg8: memref<128x256xbf16, #tpu.memory_space<vmem>>, %arg9: memref<1x32x256xbf16, #tpu.memory_space<vmem>>) attributes {dimension_semantics = [#tpu.dimension_semantics<parallel>, #tpu.dimension_semantics<parallel>], iteration_bounds = array<i64: 2, 1>, scalar_prefetch = 0 : i64, scratch_operands = 0 : i64, tpu.core_type = #tpu.core_type<tc>, window_params = [{transform_indices = @transform_0, window_bounds = array<i64: 1, 32, 128>}, {transform_indices = @transform_1, window_bounds = array<i64: 1, 32, 256>}, {pipeline_mode = #tpu.pipeline_mode<synchronous>, transform_indices = @transform_2, window_bounds = array<i64: 1, 256>}, {pipeline_mode = #tpu.pipeline_mode<synchronous>, transform_indices = @transform_3, window_bounds = array<i64: 1, 256>}, {pipeline_mode = #tpu.pipeline_mode<synchronous>, transform_indices = @transform_4, window_bounds = array<i64: 1, 256>}, {pipeline_mode = #tpu.pipeline_mode<synchronous>, transform_indices = @transform_5, window_bounds = array<i64: 1, 256>}, {pipeline_mode = #tpu.pipeline_mode<synchronous>, transform_indices = @transform_6, window_bounds = array<i64: 128, 256>}, {transform_indices = @transform_7, window_bounds = array<i64: 1, 32, 256>}]} {
    %c0 = arith.constant 0 : index
    %c0_0 = arith.constant 0 : index
    %c0_1 = arith.constant 0 : index
    %0 = vector.load %arg2[%c0, %c0_0, %c0_1] : memref<1x32x128xbf16, #tpu.memory_space<vmem>>, vector<1x32x128xbf16>
    %1 = vector.shape_cast %0 : vector<1x32x128xbf16> to vector<32x128xbf16>
    %c0_2 = arith.constant 0 : index
    %c0_3 = arith.constant 0 : index
    %2 = vector.load %arg8[%c0_2, %c0_3] : memref<128x256xbf16, #tpu.memory_space<vmem>>, vector<128x256xbf16>
    %cst = arith.constant dense<0.000000e+00> : vector<32x256xf32>
    %3 = tpu.matmul %1, %2, %cst {dimension_numbers = #tpu.dot_dimension_numbers<[1], [0], [0], [1], [0, 0, 1, 1], [], []>} : vector<32x128xbf16>, vector<128x256xbf16>, vector<32x256xf32> -> vector<32x256xf32>
    %c0_4 = arith.constant 0 : index
    %c0_5 = arith.constant 0 : index
    %4 = vector.load %arg4[%c0_4, %c0_5] : memref<1x256xf32, #tpu.memory_space<vmem>>, vector<1x256xf32>
    %5 = vector.broadcast %4 : vector<1x256xf32> to vector<32x256xf32>
    %6 = arith.mulf %3, %5 : vector<32x256xf32>
    %c0_6 = arith.constant 0 : index
    %c0_7 = arith.constant 0 : index
    %7 = vector.load %arg5[%c0_6, %c0_7] : memref<1x256xf32, #tpu.memory_space<vmem>>, vector<1x256xf32>
    %8 = vector.broadcast %7 : vector<1x256xf32> to vector<32x256xf32>
    %9 = arith.addf %6, %8 : vector<32x256xf32>
    %cst_8 = arith.constant 0.000000e+00 : f32
    %10 = vector.broadcast %cst_8 : f32 to vector<32x256xf32>
    %11 = arith.maximumf %9, %10 : vector<32x256xf32>
    %c0_9 = arith.constant 0 : index
    %c0_10 = arith.constant 0 : index
    %c0_11 = arith.constant 0 : index
    %12 = vector.load %arg3[%c0_9, %c0_10, %c0_11] : memref<1x32x256xbf16, #tpu.memory_space<vmem>>, vector<1x32x256xbf16>
    %13 = vector.shape_cast %12 : vector<1x32x256xbf16> to vector<32x256xbf16>
    %14 = arith.extf %13 : vector<32x256xbf16> to vector<32x256xf32>
    %c0_12 = arith.constant 0 : index
    %c0_13 = arith.constant 0 : index
    %15 = vector.load %arg6[%c0_12, %c0_13] : memref<1x256xf32, #tpu.memory_space<vmem>>, vector<1x256xf32>
    %16 = vector.broadcast %15 : vector<1x256xf32> to vector<32x256xf32>
    %17 = arith.mulf %14, %16 : vector<32x256xf32>
    %c0_14 = arith.constant 0 : index
    %c0_15 = arith.constant 0 : index
    %18 = vector.load %arg7[%c0_14, %c0_15] : memref<1x256xf32, #tpu.memory_space<vmem>>, vector<1x256xf32>
    %19 = vector.broadcast %18 : vector<1x256xf32> to vector<32x256xf32>
    %20 = arith.addf %17, %19 : vector<32x256xf32>
    %cst_16 = arith.constant 0.000000e+00 : f32
    %21 = vector.broadcast %cst_16 : f32 to vector<32x256xf32>
    %22 = arith.maximumf %20, %21 : vector<32x256xf32>
    %23 = arith.addf %11, %22 : vector<32x256xf32>
    %24 = arith.truncf %23 : vector<32x256xf32> to vector<32x256xbf16>
    %c0_17 = arith.constant 0 : index
    %c0_18 = arith.constant 0 : index
    %c0_19 = arith.constant 0 : index
    %25 = vector.load %arg9[%c0_17, %c0_18, %c0_19] : memref<1x32x256xbf16, #tpu.memory_space<vmem>>, vector<1x32x256xbf16>
    %26 = vector.shape_cast %25 : vector<1x32x256xbf16> to vector<32x256xbf16>
    %27 = vector.shape_cast %24 : vector<32x256xbf16> to vector<1x32x256xbf16>
    tpu.vector_store %arg9[%c0_17, %c0_18, %c0_19], %27 {strides = array<i32>} : memref<1x32x256xbf16, #tpu.memory_space<vmem>>, vector<1x32x256xbf16>,
    return
  }
  func.func @transform_0(%arg0: i32, %arg1: i32) -> (i32, i32, i32) {
    %c0_i32 = arith.constant 0 : i32
    %c0_i32_0 = arith.constant 0 : i32
    return %arg0, %arg1, %c0_i32 : i32, i32, i32
  }
  func.func @transform_1(%arg0: i32, %arg1: i32) -> (i32, i32, i32) {
    %c0_i32 = arith.constant 0 : i32
    %c0_i32_0 = arith.constant 0 : i32
    return %arg0, %arg1, %c0_i32 : i32, i32, i32
  }
  func.func @transform_2(%arg0: i32, %arg1: i32) -> (i32, i32) {
    %c0_i32 = arith.constant 0 : i32
    %c0_i32_0 = arith.constant 0 : i32
    %c0_i32_1 = arith.constant 0 : i32
    return %c0_i32, %c0_i32_0 : i32, i32
  }
  func.func @transform_3(%arg0: i32, %arg1: i32) -> (i32, i32) {
    %c0_i32 = arith.constant 0 : i32
    %c0_i32_0 = arith.constant 0 : i32
    %c0_i32_1 = arith.constant 0 : i32
    return %c0_i32, %c0_i32_0 : i32, i32
  }
  func.func @transform_4(%arg0: i32, %arg1: i32) -> (i32, i32) {
    %c0_i32 = arith.constant 0 : i32
    %c0_i32_0 = arith.constant 0 : i32
    %c0_i32_1 = arith.constant 0 : i32
    return %c0_i32, %c0_i32_0 : i32, i32
  }
  func.func @transform_5(%arg0: i32, %arg1: i32) -> (i32, i32) {
    %c0_i32 = arith.constant 0 : i32
    %c0_i32_0 = arith.constant 0 : i32
    %c0_i32_1 = arith.constant 0 : i32
    return %c0_i32, %c0_i32_0 : i32, i32
  }
  func.func @transform_6(%arg0: i32, %arg1: i32) -> (i32, i32) {
    %c0_i32 = arith.constant 0 : i32
    %c0_i32_0 = arith.constant 0 : i32
    %c0_i32_1 = arith.constant 0 : i32
    return %c0_i32, %c0_i32_0 : i32, i32
  }
  func.func @transform_7(%arg0: i32, %arg1: i32) -> (i32, i32, i32) {
    %c0_i32 = arith.constant 0 : i32
    %c0_i32_0 = arith.constant 0 : i32
    return %arg0, %arg1, %c0_i32 : i32, i32, i32
  }
}

</mosaic_0001>

<bundles_post_ra>
// kernel: tile.58
= control target key start
LH: loop header
LB: loop body
LE: loop exit
PB: predicated region body
PF: predicated region fallthrough
CT: control target
= control target key end

     0   :  { %s40_s0 = inlined_call_operand.vmem [shape: f32[8], index: 0, kind: input, shape index: {}]   ;;  %s41_s1 = inlined_call_operand.vmem [shape: f32[32,8], index: 1, kind: output, shape index: {}]  }
   0x1   :  { %v4_v0 = vld [vmem:[%s40_s0] ss:$0 sm:$0xff] }
   0x2   :  { %5 = vst [vmem:[%s41_s1] sm:$0xff] %v4_v0  ;;  %12 = vst [vmem:[%s41_s1 + $0x8] sm:$0xff] %v4_v0 }
   0x3   :  { %13 = vst [vmem:[%s41_s1 + $0x10] sm:$0xff] %v4_v0  ;;  %14 = vst [vmem:[%s41_s1 + $0x18] sm:$0xff] %v4_v0 }

// kernel: tile.59
= control target key start
LH: loop header
LB: loop body
LE: loop exit
PB: predicated region body
PF: predicated region fallthrough
CT: control target
= control target key end

     0   :  { %s7_s6 = smov 3  ;;  %s21_s9 = smov 3  ;;  %vm4_vm0 = vcmask 64512   ;;  %vm11_vm1 = vcmask 1048512   ;;  %vm18_vm2 = vcmask 982912   ;;  %vm25_vm3 = vcmask 917312   ;;  %s232_s0 = inlined_call_operand.vmem [shape: f32[32,8], index: 0, kind: input, shape index: {}]   ;;  %s233_s1 = inlined_call_operand.vmem [shape: f32[1,256], index: 1, kind: output, shape index: {}]  }
   0x1   :  { %v122_v0 = vld [vmem:[%s232_s0 + $0xf] ss:$16 sm:%s7_s6]   ;;  %s153_s10 = smov 120   ;;  %v124_v1 = vld [vmem:[%s232_s0 + $0xd] ss:$16 sm:%s21_s9]   ;;  %s14_s13 = smov 3 }
   0x2   :  { %9 = vrot.lane.b32.xlu0 %v122_v0, %s153_s10  ;;  %s154_s14 = smov 104   ;;  %v123_v2 = vld [vmem:[%s232_s0 + $0xe] ss:$16 sm:%s14_s13]   ;;  %s28_s17 = smov 3  ;;  %vm32_vm4 = vcmask 851712   ;;  %vm39_vm5 = vcmask 786112  }
   0x3   :  { %23 = vrot.lane.b32.xlu1 %v124_v1, %s154_s14  ;;  %v125_v3 = vld [vmem:[%s232_s0 + $0xc] ss:$16 sm:%s28_s17]   ;;  %s35_s20 = smov 3  ;;  %s42_s21 = smov 3  ;;  %vm46_vm6 = vcmask 720512   ;;  %vm53_vm7 = vcmask 654912  }
   0x4   :  { %s155_s22 = smov 112   ;;  %s156_s23 = smov 96   ;;  %v126_v4 = vld [vmem:[%s232_s0 + $0xb] ss:$16 sm:%s35_s20]   ;;  %v127_v5 = vld [vmem:[%s232_s0 + $0xa] ss:$16 sm:%s42_s21]  }
   0x5   :  { %s49_s28 = smov 3  ;;  %s56_s29 = smov 3  ;;  %vm60_vm8 = vcmask 589312   ;;  %vm67_vm9 = vcmask 523712   ;;  %vm74_vm10 = vcmask 458112   ;;  %vm81_vm11 = vcmask 392512  }
   0x6   :  { %16 = vrot.lane.b32.xlu0 %v123_v2, %s155_s22  ;;  %s157_s30 = smov 88   ;;  %s158_s2 = smov 80   ;;  %v128_v6 = vld [vmem:[%s232_s0 + $0x9] ss:$16 sm:%s49_s28]   ;;  %vm88_vm12 = vcmask 326912   ;;  %vm95_vm13 = vcmask 261312  }
   0x7   :  { %30 = vrot.lane.b32.xlu1 %v125_v3, %s156_s23  ;;  %v129_v7 = vld [vmem:[%s232_s0 + $0x8] ss:$16 sm:%s56_s29]   ;;  %s63_s7 = smov 3  ;;  %s70_s8 = smov 3  ;;  %vm102_vm14 = vcmask 195712   ;;  %vm109_vm15 = vcmask 130112  }
   0x8   :  { %s159_s9 = smov 72   ;;  %s160_s10 = smov 64   ;;  %v130_v8 = vld [vmem:[%s232_s0 + $0x7] ss:$16 sm:%s63_s7]   ;;  %v131_v9 = vld [vmem:[%s232_s0 + $0x6] ss:$16 sm:%s70_s8]  }
   0x9   :  { %s2_s13 = smov 3  ;;  %s77_s16 = smov 3 }
   0xa   :  { %37 = vrot.lane.b32.xlu0 %v126_v4, %s157_s30  ;;  %v3_v10 = vld [vmem:[%s232_s0] ss:$16 sm:%s2_s13]   ;;  %s84_s19 = smov 3  ;;  %s161_s20 = smov 56  }
   0xb   :  { %44 = vrot.lane.b32.xlu1 %v127_v5, %s158_s2  ;;  %5 = vst.msk [vmem:[#allocation0] ss:$8 sm:$0x3] %vm4_vm0, %v3_v10   ;;  %s162_s21 = smov 48   ;;  %v132_v11 = vld [vmem:[%s232_s0 + $0x5] ss:$16 sm:%s77_s16]  }
   0xc   :  { %v133_v12 = vld [vmem:[%s232_s0 + $0x4] ss:$16 sm:%s84_s19]   ;;  %s91_s26 = smov 3  ;;  %s98_s27 = smov 3 }
   0xd   :  { %s163_s28 = smov 40   ;;  %s164_s29 = smov 32   ;;  %v134_v13 = vld [vmem:[%s232_s0 + $0x3] ss:$16 sm:%s91_s26]   ;;  %v135_v14 = vld [vmem:[%s232_s0 + $0x2] ss:$16 sm:%s98_s27]  }
   0xe   :  { %51 = vrot.lane.b32.xlu0 %v128_v6, %s159_s9  ;;  %s105_s5 = smov 3  ;;  %s165_s6 = smov 24  }
   0xf   :  { %58 = vrot.lane.b32.xlu1 %v129_v7, %s160_s10  ;;  %s166_s7 = smov 16   ;;  %v136_v15 = vld [vmem:[%s232_s0 + $0x1] ss:$16 sm:%s105_s5]   ;;  %s167_s0 = smov 8  }
  0x12   :  { %65 = vrot.lane.b32.xlu0 %v130_v8, %s161_s20 }
  0x13   :  { %72 = vrot.lane.b32.xlu1 %v131_v9, %s162_s21 }
  0x16   :  { %79 = vrot.lane.b32.xlu0 %v132_v11, %s163_s28 }
  0x17   :  { %86 = vrot.lane.b32.xlu1 %v133_v12, %s164_s29 }
  0x1a   :  { %93 = vrot.lane.b32.xlu0 %v134_v13, %s165_s6 }
  0x1b   :  { %100 = vrot.lane.b32.xlu1 %v135_v14, %s166_s7 }
  0x1e   :  { %107 = vrot.lane.b32.xlu0 %v136_v15, %s167_s0 }
  0x74   :  { %v10_v16 = vpop.permute.xlu0 %9  }
  0x75   :  { %12 = vst.msk [vmem:[#allocation0] ss:$8 sm:$0x3] %vm11_vm1, %v10_v16   ;;  %v24_v17 = vpop.permute.xlu1 %23  }
  0x78   :  { %v17_v18 = vpop.permute.xlu0 %16  }
  0x79   :  { %19 = vst.msk [vmem:[#allocation0] ss:$8 sm:$0x3] %vm18_vm2, %v17_v18   ;;  %v31_v19 = vpop.permute.xlu1 %30  }
  0x7a   :  { %26 = vst.msk [vmem:[#allocation0] ss:$8 sm:$0x3] %vm25_vm3, %v24_v17  }
  0x7b   :  { %33 = vst.msk [vmem:[#allocation0] ss:$8 sm:$0x3] %vm32_vm4, %v31_v19  }
  0x7c   :  { %v38_v20 = vpop.permute.xlu0 %37  }
  0x7d   :  { %40 = vst.msk [vmem:[#allocation0] ss:$8 sm:$0x3] %vm39_vm5, %v38_v20   ;;  %v45_v21 = vpop.permute.xlu1 %44  }
  0x7e   :  { %47 = vst.msk [vmem:[#allocation0] ss:$8 sm:$0x3] %vm46_vm6, %v45_v21  }
  0x80   :  { %v52_v22 = vpop.permute.xlu0 %51  }
  0x81   :  { %54 = vst.msk [vmem:[#allocation0] ss:$8 sm:$0x3] %vm53_vm7, %v52_v22   ;;  %v59_v23 = vpop.permute.xlu1 %58  }
  0x82   :  { %61 = vst.msk [vmem:[#allocation0] ss:$8 sm:$0x3] %vm60_vm8, %v59_v23  }
  0x84   :  { %v66_v24 = vpop.permute.xlu0 %65  }
  0x85   :  { %68 = vst.msk [vmem:[#allocation0] ss:$8 sm:$0x3] %vm67_vm9, %v66_v24   ;;  %v73_v25 = vpop.permute.xlu1 %72  }
  0x86   :  { %75 = vst.msk [vmem:[#allocation0] ss:$8 sm:$0x3] %vm74_vm10, %v73_v25  }
  0x88   :  { %v80_v26 = vpop.permute.xlu0 %79  }
  0x89   :  { %82 = vst.msk [vmem:[#allocation0] ss:$8 sm:$0x3] %vm81_vm11, %v80_v26   ;;  %v87_v27 = vpop.permute.xlu1 %86  }
  0x8a   :  { %89 = vst.msk [vmem:[#allocation0] ss:$8 sm:$0x3] %vm88_vm12, %v87_v27  }
  0x8c   :  { %v94_v28 = vpop.permute.xlu0 %93  }
  0x8d   :  { %96 = vst.msk [vmem:[#allocation0] ss:$8 sm:$0x3] %vm95_vm13, %v94_v28   ;;  %v101_v29 = vpop.permute.xlu1 %100  }
  0x8e   :  { %103 = vst.msk [vmem:[#allocation0] ss:$8 sm:$0x3] %vm102_vm14, %v101_v29  }
  0x90   :  { %v108_v30 = vpop.permute.xlu0 %107  }
  0x91   :  { %110 = vst.msk [vmem:[#allocation0] ss:$8 sm:$0x3] %vm109_vm15, %v108_v30  }
  0x98   :  { %v114_v31 = vld [vmem:[#allocation0] sm:$0x1]  ;;  %v118_v32 = vld [vmem:[#allocation0 + $0x8] sm:$0x1] }
  0x99   :  { %116 = vst [vmem:[%s233_s1] sm:$0x1] %v114_v31  ;;  %137 = vst [vmem:[%s233_s1 + $0x1] sm:$0x1] %v118_v32 }

// kernel: conv_res_block.5
= control target key start
LH: loop header
LB: loop body
LE: loop exit
PB: predicated region body
PF: predicated region fallthrough
CT: control target
= control target key end

     0   :  { %s957_s24 = smov 0   ;;  %s959_s25 = smov 0   ;;  %s1065_s0 = inlined_call_operand.vmem [shape: bf16[2,32,128], index: 0, kind: input, shape index: {}]   ;;  %s1066_s1 = inlined_call_operand.vmem [shape: bf16[2,32,256], index: 1, kind: input, shape index: {}]   ;;  %s1067_s2 = inlined_call_operand.vmem [shape: f32[1,256], index: 2, kind: input, shape index: {}]   ;;  %s1068_s3 = inlined_call_operand.vmem [shape: f32[1,256], index: 3, kind: input, shape index: {}]   ;;  %s1069_s4 = inlined_call_operand.vmem [shape: f32[1,256], index: 4, kind: input, shape index: {}]   ;;  %s1070_s5 = inlined_call_operand.vmem [shape: f32[1,256], index: 5, kind: input, shape index: {}]   ;;  %s1071_s6 = inlined_call_operand.vmem [shape: bf16[128,256], index: 6, kind: input, shape index: {}]   ;;  %s1072_s7 = inlined_call_operand.vmem [shape: bf16[2,32,256], index: 7, kind: output, shape index: {}]  }
   0x1   :  { %s961_s26 = smov 0  }
   0x2 LB: > { %s29_s27 = sadd.s32 1, %s910_s25  ;;  %p787_p0 = scmp.ge.s32.totalorder %s914_s26, 1  ;;  %s914_s26 = sphi %s961_s26, %s17_s26   ;;  %s910_s25 = sphi %s959_s25, %s1074_s25   ;;  %s906_s24 = sphi %s957_s24, %s1073_s24  }
   0x3   : > { %p31_p1 = scmp.ge.s32.totalorder %s29_s27, 2  ;;  %p276_p2 = scmp.lt.s32.totalorder %s914_s26, 3 }
   0x5   : > { %s1076_s27 = smov (%p31_p1, %s29_s27), 0  ;;  %p277_p3 = pnand %p787_p0, %p276_p2 }
   0x6   : > { %v866_v0 = vld [vmem:[%s1071_s6 + $0x4] ss:$8 sps:$4 sm:$0xff] (!%p277_p3)   ;;  %p328_p4 = scmp.lt.s32.totalorder (!%p277_p3), %s906_s24, 1  ;;  %v868_v1 = vld [vmem:[%s1071_s6] ss:$8 sps:$4 sm:$0xff] (!%p277_p3)   ;;  %v916_v2 = vmov (!%p277_p3), 0   ;;  %v527_v19 = vlaneseq (!%p277_p3) }
   0x7   : > { %280 = sbr.rel (%p277_p3) target bundleno = 266 (0x10a), region = 48  ;;  %504 = vmatprep.mubr.bf16.mxu0 (!%p277_p3), %v916_v2  ;;  %514 = vmatprep.mubr.bf16.mxu1 (!%p277_p3), %v916_v2  ;;  %v869_v3 = vld [vmem:[%s1071_s6 + $0x14] ss:$8 sps:$4 sm:$0xff] (!%p277_p3)   ;;  %v871_v4 = vld [vmem:[%s1071_s6 + $0x10] ss:$8 sps:$4 sm:$0xff] (!%p277_p3)  }
   0x8   : > { %472 = vmatprep.subr.bf16.mxu0 (!%p277_p3), %v866_v0  ;;  %825 = vmatprep.subr.bf16.mxu1 (!%p277_p3), %v866_v0  ;;  %v872_v5 = vld [vmem:[%s1071_s6 + $0x24] ss:$8 sps:$4 sm:$0xff] (!%p277_p3)   ;;  %v874_v6 = vld [vmem:[%s1071_s6 + $0x20] ss:$8 sps:$4 sm:$0xff] (!%p277_p3)   ;;  %v875_v7 = vld [vmem:[%s1071_s6 + $0x34] ss:$8 sps:$4 sm:$0xff] (!%p277_p3)  }
   0x9   : > { %473 = vmatpush1.bf16.msra.mxu0 (!%p277_p3), %v868_v1  ;;  %833 = vmatpush1.bf16.msra.mxu1 (!%p277_p3), %v868_v1  ;;  %v877_v8 = vld [vmem:[%s1071_s6 + $0x30] ss:$8 sps:$4 sm:$0xff] (!%p277_p3)   ;;  %v878_v9 = vld [vmem:[%s1071_s6 + $0x44] ss:$8 sps:$4 sm:$0xff] (!%p277_p3)   ;;  %v880_v10 = vld [vmem:[%s1071_s6 + $0x40] ss:$8 sps:$4 sm:$0xff] (!%p277_p3)  }
   0xa   : > { %474 = vmatprep.subr.bf16.mxu0 (!%p277_p3), %v869_v3  ;;  %826 = vmatprep.subr.bf16.mxu1 (!%p277_p3), %v869_v3  ;;  %v881_v11 = vld [vmem:[%s1071_s6 + $0x54] ss:$8 sps:$4 sm:$0xff] (!%p277_p3)   ;;  %v883_v12 = vld [vmem:[%s1071_s6 + $0x50] ss:$8 sps:$4 sm:$0xff] (!%p277_p3)   ;;  %v884_v13 = vld [vmem:[%s1071_s6 + $0x64] ss:$8 sps:$4 sm:$0xff] (!%p277_p3)  }
   0xb   : > { %v886_v14 = vld [vmem:[%s1071_s6 + $0x60] ss:$8 sps:$4 sm:$0xff] (!%p277_p3)   ;;  %v887_v15 = vld [vmem:[%s1071_s6 + $0x74] ss:$8 sps:$4 sm:$0xff] (!%p277_p3)   ;;  %v889_v16 = vld [vmem:[%s1071_s6 + $0x70] ss:$8 sps:$4 sm:$0xff] (!%p277_p3)  }
   0xc   : > { %v528_v20 = vshrl.u32 (!%p277_p3), %v527_v19, 7  ;;  %v585_v23 = vld [vmem:[%s1069_s4] sm:$0x3] (!%p277_p3) }
   0xd   : > { %475 = vmatpush1.bf16.msra.mxu0 (!%p277_p3), %v871_v4  ;;  %834 = vmatpush1.bf16.msra.mxu1 (!%p277_p3), %v871_v4  ;;  %v605_v30 = vld [vmem:[%s1070_s5] sm:$0x3] (!%p277_p3) }
   0xe   : > { %s1078_s24 = smov (!%p328_p4, %s906_s24), 1  ;;  %476 = vmatprep.subr.bf16.mxu0 %v872_v5  ;;  %827 = vmatprep.subr.bf16.mxu1 %v872_v5  ;;  %v529_v21 = vsub.s32 0, %v528_v20  ;;  %v533_v24 = vsub.s32 1, %v528_v20  ;;  %v525_v47 = vld [vmem:[%s1067_s2] sm:$0x3] }
   0xf   : > { %s818_s15 = sshll.u32 %s1078_s24, 4  ;;  %s819_s23 = sshll.u32 %s1078_s24, 5  ;;  %v545_v50 = vld [vmem:[%s1068_s3] sm:$0x3] }
  0x10   : > { %s1002_s22 = scalar_lea.vmem %s1065_s0, %s818_s15  ;;  %s346_s30 = scalar_lea.vmem %s1066_s1, %s819_s23  ;;  %v590_v29 = vrot.slane %v585_v23, %v529_v21  ;;  %v594_v33 = vrot.slane %v585_v23, %v533_v24  ;;  %v610_v40 = vrot.slane %v605_v30, %v529_v21  ;;  %v614_v43 = vrot.slane %v605_v30, %v533_v24 }
  0x11   : > { %477 = vmatpush1.bf16.msra.mxu0 %v874_v6  ;;  %835 = vmatpush1.bf16.msra.mxu1 %v874_v6  ;;  %v890_v17 = vld [vmem:[%s1002_s22] sm:$0xff]   ;;  %v891_v18 = vld [vmem:[%s1002_s22 + $0x8] sm:$0xff]   ;;  %v575_v25 = vld [vmem:[%s346_s30 + $0x10] sm:$0xff]  ;;  %v530_v55 = vrot.slane %v525_v47, %v529_v21  ;;  %v534_v58 = vrot.slane %v525_v47, %v533_v24  ;;  %v550_v61 = vrot.slane %v545_v50, %v529_v21  ;;  %s357_s17 = scalar_lea.vmem %s1072_s7, %s819_s23 }
  0x12   : > { %478 = vmatprep.subr.bf16.mxu0 %v875_v7  ;;  %828 = vmatprep.subr.bf16.mxu1 %v875_v7  ;;  %v573_v22 = vld [vmem:[%s346_s30] sm:$0xff]  ;;  %v574_v26 = vld [vmem:[%s346_s30 + $0x8] sm:$0xff]  ;;  %v576_v27 = vld [vmem:[%s346_s30 + $0x18] sm:$0xff]  ;;  %v581_v31 = vunpack.c.l.bf16 %v575_v25  ;;  %v582_v34 = vunpack.c.h.bf16 %v575_v25  ;;  %v554_v62 = vrot.slane %v545_v50, %v533_v24 }
  0x13   : > { %v577_v28 = vunpack.c.l.bf16 %v573_v22  ;;  %v578_v32 = vunpack.c.h.bf16 %v573_v22  ;;  %v579_v35 = vunpack.c.l.bf16 %v574_v26  ;;  %v583_v36 = vunpack.c.l.bf16 %v576_v27 }
  0x14   : > { %v580_v37 = vunpack.c.h.bf16 %v574_v26  ;;  %v584_v38 = vunpack.c.h.bf16 %v576_v27  ;;  %v601_v41 = vmul.f32 %v590_v29, %v581_v31  ;;  %v602_v44 = vmul.f32 %v594_v33, %v582_v34 }
  0x15   : > { %479 = vmatpush1.bf16.msra.mxu0 %v877_v8  ;;  %836 = vmatpush1.bf16.msra.mxu1 %v877_v8  ;;  %v597_v39 = vmul.f32 %v590_v29, %v577_v28  ;;  %v598_v42 = vmul.f32 %v594_v33, %v578_v32  ;;  %v599_v45 = vmul.f32 %v590_v29, %v579_v35 }
  0x16   : > { %480 = vmatprep.subr.bf16.mxu0 %v878_v9  ;;  %829 = vmatprep.subr.bf16.mxu1 %v878_v9  ;;  %v603_v46 = vmul.f32 %v590_v29, %v583_v36  ;;  %v600_v48 = vmul.f32 %v594_v33, %v580_v37  ;;  %v604_v49 = vmul.f32 %v594_v33, %v584_v38 }
  0x17   : > { %v617_v51 = vadd.f32 %v610_v40, %v597_v39  ;;  %v621_v52 = vadd.f32 %v610_v40, %v601_v41  ;;  %v618_v53 = vadd.f32 %v614_v43, %v598_v42  ;;  %v622_v54 = vadd.f32 %v614_v43, %v602_v44 }
  0x18   : > { %v619_v56 = vadd.f32 %v610_v40, %v599_v45  ;;  %v623_v57 = vadd.f32 %v610_v40, %v603_v46  ;;  %v620_v59 = vadd.f32 %v614_v43, %v600_v48  ;;  %v624_v60 = vadd.f32 %v614_v43, %v604_v49 }
  0x19   : > { %481 = vmatpush1.bf16.msra.mxu0 %v880_v10  ;;  %837 = vmatpush1.bf16.msra.mxu1 %v880_v10  ;;  %v625_v0 = vmax.f32 %v617_v51, 0.0  ;;  %v629_v2 = vmax.f32 %v621_v52, 0.0  ;;  %v626_v3 = vmax.f32 %v618_v53, 0.0  ;;  %v630_v4 = vmax.f32 %v622_v54, 0.0 }
  0x1a   : > { %482 = vmatprep.subr.bf16.mxu0 %v881_v11  ;;  %830 = vmatprep.subr.bf16.mxu1 %v881_v11  ;;  %v627_v9 = vmax.f32 %v619_v56, 0.0  ;;  %v631_v10 = vmax.f32 %v623_v57, 0.0 }
  0x1d   : > { %483 = vmatpush1.bf16.msra.mxu0 %v883_v12  ;;  %838 = vmatpush1.bf16.msra.mxu1 %v883_v12 }
  0x1e   : > { %484 = vmatprep.subr.bf16.mxu0 %v884_v13  ;;  %831 = vmatprep.subr.bf16.mxu1 %v884_v13 }
  0x21   : > { %485 = vmatpush1.bf16.msra.mxu0 %v886_v14  ;;  %839 = vmatpush1.bf16.msra.mxu1 %v886_v14 }
  0x22   : > { %486 = vmatprep.subr.bf16.mxu0 %v887_v15  ;;  %832 = vmatprep.subr.bf16.mxu1 %v887_v15  ;;  %v628_v15 = vmax.f32 %v620_v59, 0.0 }
  0x25   : > { %487 = vmatpush1.bf16.msra.mxu0 %v889_v16  ;;  %840 = vmatpush1.bf16.msra.mxu1 %v889_v16  ;;  %v632_v16 = vmax.f32 %v624_v60, 0.0 }
  0x28   : > { %505 = vmatmul.mubr.bf16.vlgmr.msra.gmra.mrb[0].mxu0 %v890_v17  ;;  %515 = vmatmul.mubr.bf16.vlgmr.msra.gmra.mrb[0].mxu1 %v891_v18 }
  0xfb   : > { %v506_v63 = vpop.f32.mrb[0].mxu0  ;;  %v516_v1 = vpop.f32.mrb[0].mxu1 }
  0xfc   : > { %v537_v5 = vmul.f32 %v530_v55, %v506_v63  ;;  %v541_v6 = vmul.f32 %v530_v55, %v516_v1  ;;  %v508_v7 = vpop.f32.mrb[1].mxu0  ;;  %v518_v8 = vpop.f32.mrb[1].mxu1 }
  0xfd   : > { %v538_v11 = vmul.f32 %v534_v58, %v508_v7  ;;  %v542_v12 = vmul.f32 %v534_v58, %v518_v8  ;;  %v510_v13 = vpop.f32.mrb[2].mxu0  ;;  %v520_v14 = vpop.f32.mrb[2].mxu1 }
  0xfe   : > { %v557_v17 = vadd.f32 %v550_v61, %v537_v5  ;;  %v561_v18 = vadd.f32 %v550_v61, %v541_v6  ;;  %v539_v19 = vmul.f32 %v530_v55, %v510_v13  ;;  %v543_v20 = vmul.f32 %v530_v55, %v520_v14  ;;  %v512_v21 = vpop.f32.mrb[3].mxu0  ;;  %v522_v22 = vpop.f32.mrb[3].mxu1 }
  0xff   : > { %v558_v23 = vadd.f32 %v554_v62, %v538_v11  ;;  %v562_v24 = vadd.f32 %v554_v62, %v542_v12  ;;  %v540_v25 = vmul.f32 %v534_v58, %v512_v21  ;;  %v544_v26 = vmul.f32 %v534_v58, %v522_v22 }
 0x100   : > { %v565_v27 = vmax.f32 %v557_v17, 0.0  ;;  %v569_v28 = vmax.f32 %v561_v18, 0.0  ;;  %v559_v29 = vadd.f32 %v550_v61, %v539_v19  ;;  %v563_v30 = vadd.f32 %v550_v61, %v543_v20 }
 0x101   : > { %v566_v31 = vmax.f32 %v558_v23, 0.0  ;;  %v570_v32 = vmax.f32 %v562_v24, 0.0  ;;  %v560_v33 = vadd.f32 %v554_v62, %v540_v25  ;;  %v564_v34 = vadd.f32 %v554_v62, %v544_v26 }
 0x102   : > { %v633_v35 = vadd.f32 %v625_v0, %v565_v27  ;;  %v637_v36 = vadd.f32 %v629_v2, %v569_v28  ;;  %v567_v37 = vmax.f32 %v559_v29, 0.0  ;;  %v571_v38 = vmax.f32 %v563_v30, 0.0 }
 0x103   : > { %v634_v39 = vadd.f32 %v626_v3, %v566_v31  ;;  %v638_v40 = vadd.f32 %v630_v4, %v570_v32  ;;  %v568_v41 = vmax.f32 %v560_v33, 0.0  ;;  %v572_v42 = vmax.f32 %v564_v34, 0.0 }
 0x104   : > { %v635_v43 = vadd.f32 %v627_v9, %v567_v37  ;;  %v639_v44 = vadd.f32 %v631_v10, %v571_v38 }
 0x105   : > { %v821_v45 = vpack.c.bf16 %v634_v39, %v633_v35  ;;  %v823_v46 = vpack.c.bf16 %v638_v40, %v637_v36  ;;  %v636_v47 = vadd.f32 %v628_v15, %v568_v41  ;;  %v640_v48 = vadd.f32 %v632_v16, %v572_v42 }
 0x107   : > { %665 = vst [vmem:[%s357_s17] sm:$0xff] %v821_v45  ;;  %667 = vst [vmem:[%s357_s17 + $0x10] sm:$0xff] %v823_v46  ;;  %v822_v49 = vpack.c.bf16 %v636_v47, %v635_v43  ;;  %v824_v50 = vpack.c.bf16 %v640_v48, %v639_v44 }
 0x109   : > { %666 = vst [vmem:[%s357_s17 + $0x8] sm:$0xff] %v822_v49  ;;  %668 = vst [vmem:[%s357_s17 + $0x18] sm:$0xff] %v824_v50 }
 0x10a PF: > { %s17_s26 = sadd.s32 1, %s914_s26   ;;  %s1073_s24 = smov %s910_s25 }
 0x10b   : > { %p14_p5 = scmp.ge.s32.totalorder %s17_s26, 4   ;;  %s1074_s25 = smov %s1076_s27 }
 0x10d   :  { %16 = sbr.rel (!%p14_p5) target bundleno = 2 (0x2), region = 81 }

// kernel: conv_res_block.3
= control target key start
LH: loop header
LB: loop body
LE: loop exit
PB: predicated region body
PF: predicated region fallthrough
CT: control target
= control target key end

     0   :  { %s2269_s27 = smov 0   ;;  %s2271_s28 = smov 0   ;;  %s2721_s0 = inlined_call_operand.vmem [shape: bf16[2,32,128], index: 0, kind: input, shape index: {}]   ;;  %s2722_s1 = inlined_call_operand.vmem [shape: bf16[2,2,128], index: 1, kind: input, shape index: {}]   ;;  %s2723_s2 = inlined_call_operand.vmem [shape: bf16[384,512], index: 2, kind: input, shape index: {}]   ;;  %s2724_s3 = inlined_call_operand.vmem [shape: bf16[2,32,256], index: 3, kind: output, shape index: {0}]   ;;  %s2725_s4 = inlined_call_operand.vmem [shape: bf16[2,1,2,256], index: 4, kind: output, shape index: {1}]   ;;  %s2726_s5 = inlined_call_operand.vmem [shape: f32[2,1,1,256], index: 5, kind: output, shape index: {2}]   ;;  %s2727_s6 = inlined_call_operand.vmem [shape: f32[2,1,1,256], index: 6, kind: output, shape index: {3}]   ;;  %s2728_s7 = inlined_call_operand.vmem [shape: f32[2,1,1,256], index: 7, kind: output, shape index: {4}]   ;;  %s2729_s8 = inlined_call_operand.vmem [shape: f32[2,1,1,256], index: 8, kind: output, shape index: {5}]  }
   0x1   :  { %s2273_s29 = smov 0  }
   0x2 LB: > { %s31_s30 = sadd.s32 1, %s2216_s28  ;;  %p1888_p0 = scmp.ge.s32.totalorder %s2220_s29, 1  ;;  %s2220_s29 = sphi %s2273_s29, %s19_s29   ;;  %s2216_s28 = sphi %s2271_s28, %s2735_s28   ;;  %s2212_s27 = sphi %s2269_s27, %s2734_s27  }
   0x3   : > { %p33_p1 = scmp.ge.s32.totalorder %s31_s30, 2  ;;  %p316_p2 = scmp.lt.s32.totalorder %s2220_s29, 3 }
   0x5   : > { %s2737_s30 = smov (%p33_p1, %s31_s30), 0  ;;  %p317_p3 = pnand %p1888_p0, %p316_p2 }
   0x6   : > { %v2051_v0 = vld [vmem:[%s2723_s2 + $0x4] ss:$16 sps:$4 sm:$0xff] (!%p317_p3)   ;;  %v2053_v1 = vld [vmem:[%s2723_s2 + $0xc] ss:$16 sps:$4 sm:$0xff] (!%p317_p3)   ;;  %v2055_v2 = vld [vmem:[%s2723_s2] ss:$16 sps:$4 sm:$0xff] (!%p317_p3)  }
   0x7   : > { %320 = sbr.rel (%p317_p3) target bundleno = 359 (0x167), region = 32  ;;  %1114 = vmatprep.subr.bf16.mxu0 (!%p317_p3), %v2051_v0  ;;  %v2056_v3 = vld [vmem:[%s2723_s2 + $0x8] ss:$16 sps:$4 sm:$0xff] (!%p317_p3)   ;;  %1220 = vmatprep.subr.bf16.mxu1 (!%p317_p3), %v2053_v1  ;;  %v2057_v4 = vld [vmem:[%s2723_s2 + $0x24] ss:$16 sps:$4 sm:$0xff] (!%p317_p3)   ;;  %p404_p4 = scmp.lt.s32.totalorder (!%p317_p3), %s2212_s27, 1 }
   0x8   : > { %1115 = vmatpush1.bf16.msra.mxu0 (!%p317_p3), %v2055_v2  ;;  %1221 = vmatpush1.bf16.msra.mxu1 (!%p317_p3), %v2056_v3  ;;  %v2059_v5 = vld [vmem:[%s2723_s2 + $0x2c] ss:$16 sps:$4 sm:$0xff] (!%p317_p3)   ;;  %v2061_v6 = vld [vmem:[%s2723_s2 + $0x20] ss:$16 sps:$4 sm:$0xff] (!%p317_p3)   ;;  %v2062_v7 = vld [vmem:[%s2723_s2 + $0x28] ss:$16 sps:$4 sm:$0xff] (!%p317_p3)  }
   0x9   : > { %1116 = vmatprep.subr.bf16.mxu0 (!%p317_p3), %v2057_v4  ;;  %1222 = vmatprep.subr.bf16.mxu1 (!%p317_p3), %v2059_v5  ;;  %v2063_v8 = vld [vmem:[%s2723_s2 + $0x44] ss:$16 sps:$4 sm:$0xff] (!%p317_p3)   ;;  %v2065_v9 = vld [vmem:[%s2723_s2 + $0x4c] ss:$16 sps:$4 sm:$0xff] (!%p317_p3)   ;;  %v2067_v10 = vld [vmem:[%s2723_s2 + $0x40] ss:$16 sps:$4 sm:$0xff] (!%p317_p3)  }
   0xa   : > { %v2068_v11 = vld [vmem:[%s2723_s2 + $0x48] ss:$16 sps:$4 sm:$0xff] (!%p317_p3)   ;;  %v2069_v12 = vld [vmem:[%s2723_s2 + $0x64] ss:$16 sps:$4 sm:$0xff] (!%p317_p3)   ;;  %v2071_v13 = vld [vmem:[%s2723_s2 + $0x6c] ss:$16 sps:$4 sm:$0xff] (!%p317_p3)  }
   0xb   : > { %v2073_v14 = vld [vmem:[%s2723_s2 + $0x60] ss:$16 sps:$4 sm:$0xff] (!%p317_p3)   ;;  %v2074_v15 = vld [vmem:[%s2723_s2 + $0x68] ss:$16 sps:$4 sm:$0xff] (!%p317_p3)   ;;  %v2075_v16 = vld [vmem:[%s2723_s2 + $0x84] ss:$16 sps:$4 sm:$0xff] (!%p317_p3)  }
   0xc   : > { %1117 = vmatpush1.bf16.msra.mxu0 (!%p317_p3), %v2061_v6  ;;  %1223 = vmatpush1.bf16.msra.mxu1 (!%p317_p3), %v2062_v7  ;;  %v2077_v17 = vld [vmem:[%s2723_s2 + $0x8c] ss:$16 sps:$4 sm:$0xff] (!%p317_p3)   ;;  %v2079_v18 = vld [vmem:[%s2723_s2 + $0x80] ss:$16 sps:$4 sm:$0xff] (!%p317_p3)   ;;  %v2080_v19 = vld [vmem:[%s2723_s2 + $0x88] ss:$16 sps:$4 sm:$0xff] (!%p317_p3)  }
   0xd   : > { %1118 = vmatprep.subr.bf16.mxu0 (!%p317_p3), %v2063_v8  ;;  %1224 = vmatprep.subr.bf16.mxu1 (!%p317_p3), %v2065_v9  ;;  %v2081_v20 = vld [vmem:[%s2723_s2 + $0xa4] ss:$16 sps:$4 sm:$0xff] (!%p317_p3)   ;;  %v2083_v21 = vld [vmem:[%s2723_s2 + $0xac] ss:$16 sps:$4 sm:$0xff] (!%p317_p3)   ;;  %v2085_v22 = vld [vmem:[%s2723_s2 + $0xa0] ss:$16 sps:$4 sm:$0xff] (!%p317_p3)  }
   0xe   : > { %v2086_v23 = vld [vmem:[%s2723_s2 + $0xa8] ss:$16 sps:$4 sm:$0xff]   ;;  %v2087_v24 = vld [vmem:[%s2723_s2 + $0xc4] ss:$16 sps:$4 sm:$0xff]   ;;  %v2089_v25 = vld [vmem:[%s2723_s2 + $0xcc] ss:$16 sps:$4 sm:$0xff]  }
   0xf   : > { %v2091_v26 = vld [vmem:[%s2723_s2 + $0xc0] ss:$16 sps:$4 sm:$0xff]   ;;  %v2092_v27 = vld [vmem:[%s2723_s2 + $0xc8] ss:$16 sps:$4 sm:$0xff]   ;;  %v2093_v28 = vld [vmem:[%s2723_s2 + $0xe4] ss:$16 sps:$4 sm:$0xff]  }
  0x10   : > { %1119 = vmatpush1.bf16.msra.mxu0 %v2067_v10  ;;  %1225 = vmatpush1.bf16.msra.mxu1 %v2068_v11  ;;  %v2095_v29 = vld [vmem:[%s2723_s2 + $0xec] ss:$16 sps:$4 sm:$0xff]   ;;  %v2097_v30 = vld [vmem:[%s2723_s2 + $0xe0] ss:$16 sps:$4 sm:$0xff]   ;;  %v2098_v31 = vld [vmem:[%s2723_s2 + $0xe8] ss:$16 sps:$4 sm:$0xff]  }
  0x11   : > { %1120 = vmatprep.subr.bf16.mxu0 %v2069_v12  ;;  %1226 = vmatprep.subr.bf16.mxu1 %v2071_v13  ;;  %v2099_v32 = vld [vmem:[%s2723_s2 + $0x104] ss:$16 sps:$4 sm:$0xff]   ;;  %v2101_v33 = vld [vmem:[%s2723_s2 + $0x10c] ss:$16 sps:$4 sm:$0xff]   ;;  %v2103_v34 = vld [vmem:[%s2723_s2 + $0x100] ss:$16 sps:$4 sm:$0xff]  }
  0x12   : > { %v2104_v35 = vld [vmem:[%s2723_s2 + $0x108] ss:$16 sps:$4 sm:$0xff]   ;;  %v2105_v36 = vld [vmem:[%s2723_s2 + $0x124] ss:$16 sps:$4 sm:$0xff]   ;;  %v2107_v37 = vld [vmem:[%s2723_s2 + $0x12c] ss:$16 sps:$4 sm:$0xff]  }
  0x13   : > { %s2739_s27 = smov (!%p404_p4, %s2212_s27), 1  ;;  %v2109_v38 = vld [vmem:[%s2723_s2 + $0x120] ss:$16 sps:$4 sm:$0xff]   ;;  %v2110_v39 = vld [vmem:[%s2723_s2 + $0x128] ss:$16 sps:$4 sm:$0xff]   ;;  %vm503_vm1 = vcmask 1040384  }
  0x14   : > { %1121 = vmatpush1.bf16.msra.mxu0 %v2073_v14  ;;  %1227 = vmatpush1.bf16.msra.mxu1 %v2074_v15  ;;  %v2111_v40 = vld [vmem:[%s2723_s2 + $0x144] ss:$16 sps:$4 sm:$0xff]   ;;  %v2113_v41 = vld [vmem:[%s2723_s2 + $0x14c] ss:$16 sps:$4 sm:$0xff]   ;;  %s2003_s21 = sshll.u32 %s2739_s27, 4  ;;  %s416_s10 = scalar_lea.vmem %s2722_s1, %s2739_s27  ;;  %vm533_vm4 = vcmask 1047552  }
  0x15   : > { %1122 = vmatprep.subr.bf16.mxu0 %v2075_v16  ;;  %1228 = vmatprep.subr.bf16.mxu1 %v2077_v17  ;;  %v2115_v42 = vld [vmem:[%s2723_s2 + $0x140] ss:$16 sps:$4 sm:$0xff]   ;;  %v2116_v43 = vld [vmem:[%s2723_s2 + $0x148] ss:$16 sps:$4 sm:$0xff]   ;;  %v2117_v44 = vld [vmem:[%s2723_s2 + $0x164] ss:$16 sps:$4 sm:$0xff]   ;;  %s2435_s14 = scalar_lea.vmem %s2721_s0, %s2003_s21 }
  0x16   : > { %v2119_v45 = vld [vmem:[%s2723_s2 + $0x16c] ss:$16 sps:$4 sm:$0xff]   ;;  %v2121_v46 = vld [vmem:[%s2723_s2 + $0x160] ss:$16 sps:$4 sm:$0xff]   ;;  %v2122_v47 = vld [vmem:[%s2723_s2 + $0x168] ss:$16 sps:$4 sm:$0xff]  }
  0x17   : > { %v2123_v48 = vld [vmem:[%s2723_s2 + $0x184] ss:$16 sps:$4 sm:$0xff]   ;;  %v2125_v50 = vld [vmem:[%s2723_s2 + $0x18c] ss:$16 sps:$4 sm:$0xff]   ;;  %v2127_v51 = vld [vmem:[%s2723_s2 + $0x180] ss:$16 sps:$4 sm:$0xff]  }
  0x18   : > { %1123 = vmatpush1.bf16.msra.mxu0 %v2079_v18  ;;  %1229 = vmatpush1.bf16.msra.mxu1 %v2080_v19  ;;  %v2447_v49 = vld [vmem:[%s2435_s14] sm:$0xff]   ;;  %v2128_v52 = vld [vmem:[%s2723_s2 + $0x188] ss:$16 sps:$4 sm:$0xff]   ;;  %v2131_v54 = vld [vmem:[%s2723_s2 + $0x1ac] ss:$16 sps:$4 sm:$0xff]   ;;  %s2666_s16 = sshll.u32 %s2739_s27, 1 }
  0x19   : > { %1124 = vmatprep.subr.bf16.mxu0 %v2081_v20  ;;  %1230 = vmatprep.subr.bf16.mxu1 %v2083_v21  ;;  %v2129_v53 = vld [vmem:[%s2723_s2 + $0x1a4] ss:$16 sps:$4 sm:$0xff]   ;;  %v2133_v55 = vld [vmem:[%s2723_s2 + $0x1a0] ss:$16 sps:$4 sm:$0xff]   ;;  %v2134_v56 = vld [vmem:[%s2723_s2 + $0x1a8] ss:$16 sps:$4 sm:$0xff]   ;;  %s436_s19 = scalar_lea.vmem %s2725_s4, %s2666_s16  ;;  %s460_s21 = scalar_lea.vmem %s2728_s7, %s2666_s16 }
  0x1a   : > { %1146 = vmatprep.mubr.bf16.mxu0 %v2447_v49  ;;  %1252 = vmatprep.mubr.bf16.mxu1 %v2447_v49  ;;  %v487_v57 = vshrl.u32 %v2447_v49, 16  ;;  %v2135_v58 = vld [vmem:[%s2723_s2 + $0x1c4] ss:$16 sps:$4 sm:$0xff]   ;;  %v2137_v59 = vld [vmem:[%s2723_s2 + $0x1cc] ss:$16 sps:$4 sm:$0xff]   ;;  %v490_v63 = vshll.u32 %v2447_v49, 16  ;;  %s444_s24 = scalar_lea.vmem %s2726_s5, %s2666_s16  ;;  %s468_s9 = scalar_lea.vmem %s2729_s8, %s2666_s16 }
  0x1b   : > { %v2139_v60 = vld [vmem:[%s2723_s2 + $0x1c0] ss:$16 sps:$4 sm:$0xff]   ;;  %vm485_vm0 = vsmask.f32 256  ;;  %v2140_v61 = vld [vmem:[%s2723_s2 + $0x1c8] ss:$16 sps:$4 sm:$0xff]  }
  0x1c   : > { %1125 = vmatpush1.bf16.msra.mxu0 %v2085_v22  ;;  %1231 = vmatpush1.bf16.msra.mxu1 %v2086_v23  ;;  %v489_v62 = vrot.slane %v487_v57, 7  ;;  %v2141_v0 = vld [vmem:[%s2723_s2 + $0x1e4] ss:$16 sps:$4 sm:$0xff]   ;;  %v2143_v1 = vld [vmem:[%s2723_s2 + $0x1ec] ss:$16 sps:$4 sm:$0xff]   ;;  %vm2515_vm2 = vmand %vm503_vm1, %vm485_vm0 }
  0x1d   : > { %1126 = vmatprep.subr.bf16.mxu0 %v2087_v24  ;;  %1232 = vmatprep.subr.bf16.mxu1 %v2089_v25  ;;  %v2145_v2 = vld [vmem:[%s2723_s2 + $0x1e0] ss:$16 sps:$4 sm:$0xff]   ;;  %v2146_v3 = vld [vmem:[%s2723_s2 + $0x1e8] ss:$16 sps:$4 sm:$0xff]   ;;  %v2150_v4 = vld [vmem:[%s2723_s2 + $0x204] ss:$16 sps:$4 sm:$0xff]  }
  0x1e   : > { %v2153_v5 = vld [vmem:[%s2723_s2 + $0x20c] ss:$16 sps:$4 sm:$0xff]   ;;  %v2510_v6 = vld [vmem:[%s416_s10] sm:$0x1]  ;;  %v492_v7 = vor.u32 %v490_v63, %v489_v62  ;;  %v2151_v12 = vld [vmem:[%s2723_s2 + $0x208] ss:$16 sps:$4 sm:$0xff]  }
  0x1f   : > { %v2520_v9 = vld [vmem:[%s2435_s14 + $0x8] sm:$0xff]   ;;  %v2148_v10 = vld [vmem:[%s2723_s2 + $0x200] ss:$16 sps:$4 sm:$0xff]   ;;  %v2157_v14 = vld [vmem:[%s2723_s2 + $0x224] ss:$16 sps:$4 sm:$0xff]   ;;  %s2004_s14 = sshll.u32 %s2739_s27, 5 }
  0x20   : > { %1127 = vmatpush1.bf16.msra.mxu0 %v2091_v26  ;;  %1233 = vmatpush1.bf16.msra.mxu1 %v2092_v27  ;;  %v494_v11 = vshrl.u32 %v2520_v9, 16  ;;  %v505_v13 = vsel %vm2515_vm2, %v2510_v6, %v492_v7  ;;  %v497_v15 = vshll.u32 %v2520_v9, 16  ;;  %v2160_v16 = vld [vmem:[%s2723_s2 + $0x22c] ss:$16 sps:$4 sm:$0xff]   ;;  %v2155_v18 = vld [vmem:[%s2723_s2 + $0x220] ss:$16 sps:$4 sm:$0xff]   ;;  %s2647_s15 = scalar_lea.vmem %s2724_s3, %s2004_s14  ;;  %s452_s14 = scalar_lea.vmem %s2727_s6, %s2666_s16 }
  0x21   : > { %1128 = vmatprep.subr.bf16.mxu0 %v2093_v28  ;;  %1234 = vmatprep.subr.bf16.mxu1 %v2095_v29  ;;  %v2158_v19 = vld [vmem:[%s2723_s2 + $0x228] ss:$16 sps:$4 sm:$0xff]   ;;  %v2163_v21 = vld [vmem:[%s2723_s2 + $0x244] ss:$16 sps:$4 sm:$0xff]   ;;  %v2166_v22 = vld [vmem:[%s2723_s2 + $0x24c] ss:$16 sps:$4 sm:$0xff]  }
  0x22   : > { %v496_v17 = vrot.slane %v494_v11, 7  ;;  %v2161_v23 = vld [vmem:[%s2723_s2 + $0x240] ss:$16 sps:$4 sm:$0xff]   ;;  %v2164_v24 = vld [vmem:[%s2723_s2 + $0x248] ss:$16 sps:$4 sm:$0xff]  }
  0x23   : > { %v2169_v26 = vld [vmem:[%s2723_s2 + $0x264] ss:$16 sps:$4 sm:$0xff]   ;;  %v2172_v27 = vld [vmem:[%s2723_s2 + $0x26c] ss:$16 sps:$4 sm:$0xff]   ;;  %v2222_v28 = vmov 1966171168  }
  0x24   : > { %1129 = vmatpush1.bf16.msra.mxu0 %v2097_v30  ;;  %1235 = vmatpush1.bf16.msra.mxu1 %v2098_v31  ;;  %v499_v20 = vor.u32 %v497_v15, %v496_v17  ;;  %v517_v29 = vunpack.c.l.s4 %v2222_v28  ;;  %v519_v30 = vlaneseq  ;;  %v2167_v31 = vld [vmem:[%s2723_s2 + $0x260] ss:$16 sps:$4 sm:$0xff]   ;;  %vm506_vm3 = vsmask.f32 7424 }
  0x25   : > { %1130 = vmatprep.subr.bf16.mxu0 %v2099_v32  ;;  %1236 = vmatprep.subr.bf16.mxu1 %v2101_v33  ;;  %v2170_v32 = vld [vmem:[%s2723_s2 + $0x268] ss:$16 sps:$4 sm:$0xff]   ;;  %v2175_v33 = vld [vmem:[%s2723_s2 + $0x284] ss:$16 sps:$4 sm:$0xff]   ;;  %vm534_vm5 = vmand %vm533_vm4, %vm506_vm3 }
  0x26   : > { %v500_v25 = vsel %vm485_vm0, %v489_v62, %v499_v20  ;;  %vm2682_vm6 = vcmp.lt.s32.totalorder %v519_v30, 256 }
  0x28   : > { %1131 = vmatpush1.bf16.msra.mxu0 %v2103_v34  ;;  %1237 = vmatpush1.bf16.msra.mxu1 %v2104_v35  ;;  %v2178_v34 = vld [vmem:[%s2723_s2 + $0x28c] ss:$16 sps:$4 sm:$0xff]   ;;  %v2223_v35 = vmov 0  }
  0x29   : > { %1132 = vmatprep.subr.bf16.mxu0 %v2105_v36  ;;  %1238 = vmatprep.subr.bf16.mxu1 %v2107_v37  ;;  %v518_v36 = vunpack.c.0.s8 %v517_v29  ;;  %v520_v37 = vshrl.u32 %v519_v30, 7 }
  0x2c   : > { %1133 = vmatpush1.bf16.msra.mxu0 %v2109_v38  ;;  %1239 = vmatpush1.bf16.msra.mxu1 %v2110_v39  ;;  %v2173_v38 = vld [vmem:[%s2723_s2 + $0x280] ss:$16 sps:$4 sm:$0xff]   ;;  %v2176_v39 = vld [vmem:[%s2723_s2 + $0x288] ss:$16 sps:$4 sm:$0xff]  }
  0x2d   : > { %1134 = vmatprep.subr.bf16.mxu0 %v2111_v40  ;;  %1240 = vmatprep.subr.bf16.mxu1 %v2113_v41  ;;  %v2181_v40 = vld [vmem:[%s2723_s2 + $0x2a4] ss:$16 sps:$4 sm:$0xff]   ;;  %v2184_v41 = vld [vmem:[%s2723_s2 + $0x2ac] ss:$16 sps:$4 sm:$0xff]  }
  0x30   : > { %1135 = vmatpush1.bf16.msra.mxu0 %v2115_v42  ;;  %1241 = vmatpush1.bf16.msra.mxu1 %v2116_v43  ;;  %v515_v42 = vcombine.low %v2510_v6, %v2510_v6  ;;  %v2597_v43 = vsub.s32 %v518_v36, %v520_v37 }
  0x31   : > { %1136 = vmatprep.subr.bf16.mxu0 %v2117_v44  ;;  %1242 = vmatprep.subr.bf16.mxu1 %v2119_v45  ;;  %v2179_v44 = vld [vmem:[%s2723_s2 + $0x2a0] ss:$16 sps:$4 sm:$0xff]   ;;  %v2182_v45 = vld [vmem:[%s2723_s2 + $0x2a8] ss:$16 sps:$4 sm:$0xff]  }
  0x34   : > { %1137 = vmatpush1.bf16.msra.mxu0 %v2121_v46  ;;  %1243 = vmatpush1.bf16.msra.mxu1 %v2122_v47  ;;  %v2188_v46 = vld [vmem:[%s2723_s2 + $0x2c4] ss:$16 sps:$4 sm:$0xff]   ;;  %v2191_v47 = vld [vmem:[%s2723_s2 + $0x2cc] ss:$16 sps:$4 sm:$0xff]  }
  0x35   : > { %1138 = vmatprep.subr.bf16.mxu0 %v2123_v48  ;;  %1244 = vmatprep.subr.bf16.mxu1 %v2125_v50  ;;  %v507_v48 = vrot.slane %v490_v63, 1  ;;  %v522_v50 = vrot.slane %v515_v42, %v2597_v43 }
  0x38   : > { %1139 = vmatpush1.bf16.msra.mxu0 %v2127_v51  ;;  %1245 = vmatpush1.bf16.msra.mxu1 %v2128_v52  ;;  %v2186_v51 = vld [vmem:[%s2723_s2 + $0x2c0] ss:$16 sps:$4 sm:$0xff]   ;;  %v2189_v52 = vld [vmem:[%s2723_s2 + $0x2c8] ss:$16 sps:$4 sm:$0xff]  }
  0x39   : > { %1140 = vmatprep.subr.bf16.mxu0 %v2129_v53  ;;  %1246 = vmatprep.subr.bf16.mxu1 %v2131_v54  ;;  %v2194_v53 = vld [vmem:[%s2723_s2 + $0x2e4] ss:$16 sps:$4 sm:$0xff]   ;;  %v2197_v54 = vld [vmem:[%s2723_s2 + $0x2ec] ss:$16 sps:$4 sm:$0xff]  }
  0x3c   : > { %1141 = vmatpush1.bf16.msra.mxu0 %v2133_v55  ;;  %1247 = vmatpush1.bf16.msra.mxu1 %v2134_v56  ;;  %v523_v55 = vcombine.low %v522_v50, %v522_v50  ;;  %v2192_v56 = vld [vmem:[%s2723_s2 + $0x2e0] ss:$16 sps:$4 sm:$0xff]  }
  0x3d   : > { %1142 = vmatprep.subr.bf16.mxu0 %v2135_v58  ;;  %1248 = vmatprep.subr.bf16.mxu1 %v2137_v59  ;;  %v2195_v58 = vld [vmem:[%s2723_s2 + $0x2e8] ss:$16 sps:$4 sm:$0xff]   ;;  %v508_v59 = vor.u32 %v507_v48, %v487_v57 }
  0x3e   : > { %v530_v62 = vrot.slane %v523_v55, %v2597_v43 }
  0x40   : > { %1143 = vmatpush1.bf16.msra.mxu0 %v2139_v60  ;;  %1249 = vmatpush1.bf16.msra.mxu1 %v2140_v61  ;;  %v509_v60 = vrot.slane %v497_v15, 1  ;;  %v531_v57 = vcombine.low %v530_v62, %v530_v62 }
  0x41   : > { %1144 = vmatprep.subr.bf16.mxu0 %v2141_v0  ;;  %1250 = vmatprep.subr.bf16.mxu1 %v2143_v1 }
  0x42   : > { %v510_v61 = vsel %vm506_vm3, %v508_v59, %v509_v60  ;;  %v511_v49 = vor.u32 %v509_v60, %v494_v11 }
  0x44   : > { %1145 = vmatpush1.bf16.msra.mxu0 %v2145_v2  ;;  %1251 = vmatpush1.bf16.msra.mxu1 %v2146_v3  ;;  %v535_v63 = vsel %vm534_vm5, %v511_v49, %v531_v57 }
  0x45   : > { %1167 = vmatprep.subr.bf16.mxu0 %v2150_v4  ;;  %1273 = vmatprep.subr.bf16.mxu1 %v2153_v5 }
  0x47   : > { %1147 = vmatmul.mubr.bf16.vlgmr.msra.gmra.mrb[0].mxu0 %v505_v13  ;;  %1253 = vmatmul.mubr.bf16.vlgmr.msra.gmra.mrb[0].mxu1 %v505_v13 }
  0x48   : > { %1168 = vmatpush1.bf16.msra.mxu0 %v2148_v10  ;;  %1274 = vmatpush1.bf16.msra.mxu1 %v2151_v12 }
  0x49   : > { %1169 = vmatprep.subr.bf16.mxu0 %v2157_v14  ;;  %1275 = vmatprep.subr.bf16.mxu1 %v2160_v16 }
  0x4a   : > { %1156 = vmatprep.mubr.bf16.mxu0 %v2520_v9  ;;  %1262 = vmatprep.mubr.bf16.mxu1 %v2520_v9 }
  0x4c   : > { %1170 = vmatpush1.bf16.msra.mxu0 %v2155_v18  ;;  %1276 = vmatpush1.bf16.msra.mxu1 %v2158_v19 }
  0x4d   : > { %1171 = vmatprep.subr.bf16.mxu0 %v2163_v21  ;;  %1277 = vmatprep.subr.bf16.mxu1 %v2166_v22 }
  0x4f   : > { %1157 = vmatmul.mubr.bf16.gmra.mrb[4].mxu0 %v500_v25  ;;  %1263 = vmatmul.mubr.bf16.gmra.mrb[4].mxu1 %v500_v25 }
  0x50   : > { %1172 = vmatpush1.bf16.msra.mxu0 %v2161_v23  ;;  %1278 = vmatpush1.bf16.msra.mxu1 %v2164_v24 }
  0x51   : > { %1173 = vmatprep.subr.bf16.mxu0 %v2169_v26  ;;  %1279 = vmatprep.subr.bf16.mxu1 %v2172_v27 }
  0x52   : > { %1199 = vmatprep.mubr.bf16.mxu0 %v2223_v35  ;;  %1305 = vmatprep.mubr.bf16.mxu1 %v2223_v35 }
  0x54   : > { %1174 = vmatpush1.bf16.msra.mxu0 %v2167_v31  ;;  %1280 = vmatpush1.bf16.msra.mxu1 %v2170_v32 }
  0x55   : > { %1175 = vmatprep.subr.bf16.mxu0 %v2175_v33  ;;  %1281 = vmatprep.subr.bf16.mxu1 %v2178_v34 }
  0x58   : > { %1176 = vmatpush1.bf16.msra.mxu0 %v2173_v38  ;;  %1282 = vmatpush1.bf16.msra.mxu1 %v2176_v39 }
  0x59   : > { %1177 = vmatprep.subr.bf16.mxu0 %v2181_v40  ;;  %1283 = vmatprep.subr.bf16.mxu1 %v2184_v41 }
  0x5c   : > { %1178 = vmatpush1.bf16.msra.mxu0 %v2179_v44  ;;  %1284 = vmatpush1.bf16.msra.mxu1 %v2182_v45 }
  0x5d   : > { %1179 = vmatprep.subr.bf16.mxu0 %v2188_v46  ;;  %1285 = vmatprep.subr.bf16.mxu1 %v2191_v47 }
  0x60   : > { %1180 = vmatpush1.bf16.msra.mxu0 %v2186_v51  ;;  %1286 = vmatpush1.bf16.msra.mxu1 %v2189_v52 }
  0x61   : > { %1181 = vmatprep.subr.bf16.mxu0 %v2194_v53  ;;  %1287 = vmatprep.subr.bf16.mxu1 %v2197_v54 }
  0x64   : > { %1182 = vmatpush1.bf16.msra.mxu0 %v2192_v56  ;;  %1288 = vmatpush1.bf16.msra.mxu1 %v2195_v58 }
  0x67   : > { %1200 = vmatmul.mubr.bf16.vlgmr.msra.gmra.mrb[0].mxu0 %v510_v61  ;;  %1306 = vmatmul.mubr.bf16.vlgmr.msra.gmra.mrb[0].mxu1 %v510_v61 }
  0x68   : > { %1209 = vmatprep.mubr.bf16.mxu0 %v2223_v35  ;;  %1315 = vmatprep.mubr.bf16.mxu1 %v2223_v35 }
  0x6f   : > { %1210 = vmatmul.mubr.bf16.gmra.mrb[4].mxu0 %v535_v63  ;;  %1316 = vmatmul.mubr.bf16.gmra.mrb[4].mxu1 %v535_v63 }
 0x13a   : > { %v2640_v0 = vpop.f32.mrb[0].mxu0  ;;  %v1307_v1 = vpop.f32.mrb[0].mxu1 }
 0x13b   : > { %v1502_v2 = vmul.f32 %v2640_v0, %v2640_v0  ;;  %v2649_v3 = vpop.f32.mrb[1].mxu0  ;;  %v1309_v4 = vpop.f32.mrb[1].mxu1  ;;  %v1420_v5 = vmul.f32 %v1307_v1, %v1307_v1 }
 0x13c   : > { %v2005_v6 = vpack.c.bf16 %v2649_v3, %v2640_v0  ;;  %v1503_v7 = vmul.f32 %v2649_v3, %v2649_v3  ;;  %v1421_v9 = vmul.f32 %v1309_v4, %v1309_v4  ;;  %v1205_v10 = vpop.f32.mrb[2].mxu0  ;;  %v1311_v11 = vpop.f32.mrb[2].mxu1 }
 0x13d   : > { %v1326_v12 = vpack.c.bf16 %v1205_v10, %v2640_v0  ;;  %v1465_v13 = vadd.f32 %v1205_v10, %v2640_v0  ;;  %v1504_v14 = vmul.f32 %v1205_v10, %v1205_v10  ;;  %v1379_v15 = vadd.f32 %v1311_v11, %v1307_v1  ;;  %v1207_v16 = vpop.f32.mrb[3].mxu0  ;;  %v1313_v17 = vpop.f32.mrb[3].mxu1 }
 0x13e   : > { %1350 = vst [vmem:[%s2647_s15] sm:$0xff] %v2005_v6  ;;  %v1422_v18 = vmul.f32 %v1311_v11, %v1311_v11  ;;  %v1327_v19 = vpack.c.bf16 %v1207_v16, %v2649_v3  ;;  %v2006_v20 = vpack.c.bf16 %v1207_v16, %v1205_v10  ;;  %v1474_v21 = vadd.f32 %v1207_v16, %v2649_v3 }
 0x13f   : > { %v1510_v22 = vadd.f32 %v1504_v14, %v1502_v2  ;;  %v1505_v23 = vmul.f32 %v1207_v16, %v1207_v16  ;;  %v1388_v24 = vadd.f32 %v1313_v17, %v1309_v4  ;;  %v1423_v25 = vmul.f32 %v1313_v17, %v1313_v17 }
 0x140   : > { %v1428_v26 = vadd.f32 %v1422_v18, %v1420_v5  ;;  %1351 = vst [vmem:[%s2647_s15 + $0x8] sm:$0xff] %v2006_v20 }
 0x141   : > { %v1519_v27 = vadd.f32 %v1505_v23, %v1503_v7  ;;  %v1437_v28 = vadd.f32 %v1423_v25, %v1421_v9 }
 0x142   : > { %v1211_v29 = vpop.f32.mrb[4].mxu0  ;;  %v1317_v31 = vpop.f32.mrb[4].mxu1 }
 0x143   : > { %v1466_v32 = vadd.f32 %v1465_v13, %v1211_v29  ;;  %v1506_v33 = vmul.f32 %v1211_v29, %v1211_v29  ;;  %v1380_v34 = vadd.f32 %v1379_v15, %v1317_v31  ;;  %v1424_v35 = vmul.f32 %v1317_v31, %v1317_v31  ;;  %v1213_v36 = vpop.f32.mrb[5].mxu0  ;;  %v1319_v37 = vpop.f32.mrb[5].mxu1 }
 0x144   : > { %v2007_v38 = vpack.c.bf16 %v1213_v36, %v1211_v29  ;;  %v1507_v39 = vmul.f32 %v1213_v36, %v1213_v36  ;;  %v1389_v40 = vadd.f32 %v1388_v24, %v1319_v37  ;;  %v1425_v41 = vmul.f32 %v1319_v37, %v1319_v37  ;;  %v1215_v42 = vpop.f32.mrb[6].mxu0  ;;  %v1321_v44 = vpop.f32.mrb[6].mxu1 }
 0x145   : > { %v1511_v45 = vadd.f32 %v1510_v22, %v1506_v33  ;;  %v1429_v46 = vadd.f32 %v1428_v26, %v1424_v35  ;;  %v1328_v47 = vpack.c.bf16 %v1215_v42, %v1211_v29  ;;  %v1467_v48 = vadd.f32 %v1466_v32, %v1215_v42  ;;  %v1217_v50 = vpop.f32.mrb[7].mxu0  ;;  %v1323_v51 = vpop.f32.mrb[7].mxu1 }
 0x146   : > { %1352 = vst [vmem:[%s2647_s15 + $0x10] sm:$0xff] %v2007_v38  ;;  %v1438_v52 = vadd.f32 %v1437_v28, %v1425_v41  ;;  %v1508_v53 = vmul.f32 %v1215_v42, %v1215_v42  ;;  %v1381_v54 = vadd.f32 %v1380_v34, %v1321_v44  ;;  %v1426_v55 = vmul.f32 %v1321_v44, %v1321_v44 }
 0x147   : > { %v1354_v56 = vrot.slane %v1328_v47, 7  ;;  %v1468_v58 = vrot.slane %v1467_v48, 4  ;;  %v1329_v59 = vpack.c.bf16 %v1217_v50, %v1213_v36  ;;  %v2008_v60 = vpack.c.bf16 %v1217_v50, %v1215_v42 }
 0x148   : > { %v1512_v61 = vadd.f32 %v1511_v45, %v1508_v53  ;;  %v1382_v62 = vrot.slane %v1381_v54, 4  ;;  %v1430_v49 = vadd.f32 %v1429_v46, %v1426_v55  ;;  %v1475_v57 = vadd.f32 %v1474_v21, %v1213_v36 }
 0x149   : > { %v1469_v63 = vadd.f32 %v1468_v58, %v1467_v48  ;;  %1353 = vst [vmem:[%s2647_s15 + $0x18] sm:$0xff] %v2008_v60  ;;  %v1355_v0 = vrot.slane %v1329_v59, 7  ;;  %v1358_v1 = vsel %vm2515_vm2, %v1326_v12, %v1354_v56  ;;  %v1509_v2 = vmul.f32 %v1217_v50, %v1217_v50 }
 0x14a   : > { %v1513_v3 = vrot.slane %v1512_v61, 4  ;;  %v1383_v4 = vadd.f32 %v1382_v62, %v1381_v54  ;;  %v1431_v5 = vrot.slane %v1430_v49, 4  ;;  %v1476_v6 = vadd.f32 %v1475_v57, %v1217_v50 }
 0x14b   : > { %v1470_v7 = vrot.slane %v1469_v63, 2  ;;  %v1359_v9 = vsel %vm2515_vm2, %v1327_v19, %v1355_v0  ;;  %v1520_v10 = vadd.f32 %v1519_v27, %v1507_v39  ;;  %v1390_v11 = vadd.f32 %v1389_v40, %v1323_v51 }
 0x14c   : > { %v1514_v13 = vadd.f32 %v1513_v3, %v1512_v61  ;;  %v1384_v14 = vrot.slane %v1383_v4, 2  ;;  %v1432_v15 = vadd.f32 %v1431_v5, %v1430_v49  ;;  %v1362_v16 = vcombine.low %v1358_v1, %v1359_v9 }
 0x14d   : > { %v1471_v17 = vadd.f32 %v1470_v7, %v1469_v63  ;;  %v1477_v12 = vrot.slane %v1476_v6, 4  ;;  %v1521_v18 = vadd.f32 %v1520_v10, %v1509_v2  ;;  %v1391_v20 = vrot.slane %v1390_v11, 4 }
 0x14e   : > { %v1515_v21 = vrot.slane %v1514_v13, 2  ;;  %v1385_v22 = vadd.f32 %v1384_v14, %v1383_v4  ;;  %v1369_v23 = vrot.slane %v1362_v16, %v2597_v43  ;;  %v1433_v27 = vrot.slane %v1432_v15, 2 }
 0x14f   : > { %v1478_v8 = vadd.f32 %v1477_v12, %v1476_v6  ;;  %v1522_v19 = vrot.slane %v1521_v18, 4  ;;  %v1392_v24 = vadd.f32 %v1391_v20, %v1390_v11  ;;  %v1472_v25 = vrot.slane %v1471_v17, 1 }
 0x150   : > { %v1516_v26 = vadd.f32 %v1515_v21, %v1514_v13  ;;  %2000 = vst.sshfl [vmem:[%s436_s19] sm:$0x5 pattern:$0x73625140] %v1369_v23  ;;  %v1427_v28 = vmul.f32 %v1323_v51, %v1323_v51  ;;  %v1386_v29 = vrot.slane %v1385_v22, 1  ;;  %v1434_v40 = vadd.f32 %v1433_v27, %v1432_v15 }
 0x151   : > { %v1479_v31 = vrot.slane %v1478_v8, 2  ;;  %v1523_v32 = vadd.f32 %v1522_v19, %v1521_v18  ;;  %v1393_v33 = vrot.slane %v1392_v24, 2  ;;  %v1473_v39 = vadd.f32 %v1472_v25, %v1471_v17 }
 0x152   : > { %v1439_v34 = vadd.f32 %v1438_v52, %v1427_v28  ;;  %v1517_v35 = vrot.slane %v1516_v26, 1  ;;  %v1387_v42 = vadd.f32 %v1386_v29, %v1385_v22  ;;  %v1435_v54 = vrot.slane %v1434_v40, 1 }
 0x153   : > { %v1480_v36 = vadd.f32 %v1479_v31, %v1478_v8  ;;  %v1524_v37 = vrot.slane %v1523_v32, 2  ;;  %v1394_v38 = vadd.f32 %v1393_v33, %v1392_v24 }
 0x154   : > { %v1440_v41 = vrot.slane %v1439_v34, 4  ;;  %v1518_v48 = vadd.f32 %v1517_v35, %v1516_v26  ;;  %v1436_v49 = vadd.f32 %v1435_v54, %v1434_v40 }
 0x155   : > { %v1481_v44 = vrot.slane %v1480_v36, 1  ;;  %v1525_v45 = vadd.f32 %v1524_v37, %v1523_v32  ;;  %v1395_v46 = vrot.slane %v1394_v38, 1 }
 0x156   : > { %v1441_v47 = vadd.f32 %v1440_v41, %v1439_v34 }
 0x157   : > { %v1482_v50 = vadd.f32 %v1481_v44, %v1480_v36  ;;  %v1526_v51 = vrot.slane %v1525_v45, 1  ;;  %v1396_v53 = vadd.f32 %v1395_v46, %v1394_v38 }
 0x158   : > { %v1442_v52 = vrot.slane %v1441_v47, 2 }
 0x159   : > { %v1485_v55 = vcombine.low %v1473_v39, %v1482_v50  ;;  %v1527_v56 = vadd.f32 %v1526_v51, %v1525_v45  ;;  %v1399_v58 = vcombine.low %v1387_v42, %v1396_v53 }
 0x15a   : > { %v1443_v59 = vadd.f32 %v1442_v52, %v1441_v47 }
 0x15b   : > { %v1492_v60 = vrot.slane %v1485_v55, %v2597_v43  ;;  %v1530_v61 = vcombine.low %v1518_v48, %v1527_v56  ;;  %v1406_v62 = vrot.slane %v1399_v58, %v2597_v43 }
 0x15c   : > { %v1444_v63 = vrot.slane %v1443_v59, 1 }
 0x15d   : > { %v1499_v0 = vrot.slane %v1492_v60, %v2597_v43  ;;  %v1537_v1 = vrot.slane %v1530_v61, %v2597_v43  ;;  %v1413_v2 = vrot.slane %v1406_v62, %v2597_v43 }
 0x15e   : > { %v1445_v3 = vadd.f32 %v1444_v63, %v1443_v59 }
 0x15f   : > { %1501 = vst.msk [vmem:[%s460_s21] sm:$0x3] %vm2682_vm6, %v1499_v0  ;;  %v1544_v30 = vrot.slane %v1537_v1, %v2597_v43  ;;  %1419 = vst.msk [vmem:[%s444_s24] sm:$0x3] %vm2682_vm6, %v1413_v2 }
 0x160   : > { %v1448_v4 = vcombine.low %v1436_v49, %v1445_v3 }
 0x161   : > { %1546 = vst.msk [vmem:[%s468_s9] sm:$0x3] %vm2682_vm6, %v1544_v30 }
 0x162   : > { %v1455_v5 = vrot.slane %v1448_v4, %v2597_v43 }
 0x164   : > { %v1462_v6 = vrot.slane %v1455_v5, %v2597_v43 }
 0x166   : > { %1464 = vst.msk [vmem:[%s452_s14] sm:$0x3] %vm2682_vm6, %v1462_v6 }
 0x167 PF: > { %s19_s29 = sadd.s32 1, %s2220_s29   ;;  %s2734_s27 = smov %s2216_s28 }
 0x168   : > { %p16_p5 = scmp.ge.s32.totalorder %s19_s29, 4   ;;  %s2735_s28 = smov %s2737_s30 }
 0x16a   :  { %18 = sbr.rel (!%p16_p5) target bundleno = 2 (0x2), region = 125 }

// kernel: conv_res_block.4
= control target key start
LH: loop header
LB: loop body
LE: loop exit
PB: predicated region body
PF: predicated region fallthrough
CT: control target
= control target key end

     0   :  { %s2269_s26 = smov 0   ;;  %s2271_s2 = smov 0   ;;  %s2690_s0 = inlined_call_operand.vmem [shape: bf16[2,32,256], index: 0, kind: input, shape index: {}]   ;;  %s2691_s1 = inlined_call_operand.vmem [shape: bf16[2,1,2,256], index: 1, kind: input, shape index: {}, may-alias: {1,2}]   ;;  %s2692_s2 = inlined_call_operand.vmem [shape: bf16[2,1,2,256], index: 2, kind: input, shape index: {}, may-alias: {1,2}]   ;;  %s2693_s3 = inlined_call_operand.vmem [shape: bf16[1,256], index: 3, kind: input, shape index: {}]   ;;  %s2694_s4 = inlined_call_operand.vmem [shape: bf16[1,256], index: 4, kind: input, shape index: {}]   ;;  %s2695_s5 = inlined_call_operand.vmem [shape: bf16[768,256], index: 5, kind: input, shape index: {}]   ;;  %s2696_s6 = inlined_call_operand.vmem [shape: bf16[2,32,256], index: 6, kind: output, shape index: {0}]   ;;  %s2697_s7 = inlined_call_operand.vmem [shape: f32[2,1,1,256], index: 7, kind: output, shape index: {1}]   ;;  %s2698_s8 = inlined_call_operand.vmem [shape: f32[2,1,1,256], index: 8, kind: output, shape index: {2}]  }
   0x1   :  { %s2273_s27 = smov 0  }
   0x2 LB: > { %s31_s28 = sadd.s32 1, %s2216_s2  ;;  %p1855_p0 = scmp.ge.s32.totalorder %s2220_s27, 1  ;;  %s2220_s27 = sphi %s2273_s27, %s19_s27   ;;  %s2216_s2 = sphi %s2271_s2, %s2702_s2   ;;  %s2212_s26 = sphi %s2269_s26, %s2701_s26  }
   0x3   : > { %p33_p1 = scmp.ge.s32.totalorder %s31_s28, 2  ;;  %p347_p2 = scmp.lt.s32.totalorder %s2220_s27, 3 }
   0x5   : > { %s2704_s28 = smov (%p33_p1, %s31_s28), 0  ;;  %p348_p3 = pnand %p1855_p0, %p347_p2 }
   0x6   : > { %v2054_v0 = vld [vmem:[%s2695_s5 + $0x4] ss:$8 sps:$4 sm:$0xff] (!%p348_p3)   ;;  %v2058_v2 = vld [vmem:[%s2695_s5] ss:$8 sps:$4 sm:$0xff] (!%p348_p3)   ;;  %v2060_v4 = vld [vmem:[%s2695_s5 + $0x14] ss:$8 sps:$4 sm:$0xff] (!%p348_p3)   ;;  %v515_v39 = vlaneseq (!%p348_p3) }
   0x7   : > { %351 = sbr.rel (%p348_p3) target bundleno = 380 (0x17c), region = 44  ;;  %v2056_v1 = vld [vmem:[%s2695_s5 + $0x104] ss:$8 sps:$4 sm:$0xff] (!%p348_p3)   ;;  %1352 = vmatprep.subr.bf16.mxu1 (!%p348_p3), %v2054_v0  ;;  %v2059_v3 = vld [vmem:[%s2695_s5 + $0x100] ss:$8 sps:$4 sm:$0xff] (!%p348_p3)   ;;  %p430_p4 = scmp.lt.s32.totalorder (!%p348_p3), %s2212_s26, 1 }
   0x8   : > { %1405 = vmatprep.subr.bf16.mxu0 (!%p348_p3), %v2056_v1  ;;  %1353 = vmatpush1.bf16.msra.mxu1 (!%p348_p3), %v2058_v2  ;;  %v2062_v5 = vld [vmem:[%s2695_s5 + $0x114] ss:$8 sps:$4 sm:$0xff] (!%p348_p3)   ;;  %v2064_v6 = vld [vmem:[%s2695_s5 + $0x10] ss:$8 sps:$4 sm:$0xff] (!%p348_p3)   ;;  %v2066_v8 = vld [vmem:[%s2695_s5 + $0x24] ss:$8 sps:$4 sm:$0xff] (!%p348_p3)  }
   0x9   : > { %1406 = vmatpush1.bf16.msra.mxu0 (!%p348_p3), %v2059_v3  ;;  %1354 = vmatprep.subr.bf16.mxu1 (!%p348_p3), %v2060_v4  ;;  %v2065_v7 = vld [vmem:[%s2695_s5 + $0x110] ss:$8 sps:$4 sm:$0xff] (!%p348_p3)   ;;  %v2068_v9 = vld [vmem:[%s2695_s5 + $0x124] ss:$8 sps:$4 sm:$0xff] (!%p348_p3)   ;;  %v2070_v10 = vld [vmem:[%s2695_s5 + $0x20] ss:$8 sps:$4 sm:$0xff] (!%p348_p3)  }
   0xa   : > { %1407 = vmatprep.subr.bf16.mxu0 (!%p348_p3), %v2062_v5  ;;  %v2071_v11 = vld [vmem:[%s2695_s5 + $0x120] ss:$8 sps:$4 sm:$0xff] (!%p348_p3)   ;;  %v2072_v12 = vld [vmem:[%s2695_s5 + $0x34] ss:$8 sps:$4 sm:$0xff] (!%p348_p3)   ;;  %v2076_v14 = vld [vmem:[%s2695_s5 + $0x30] ss:$8 sps:$4 sm:$0xff] (!%p348_p3)  }
   0xb   : > { %v2074_v13 = vld [vmem:[%s2695_s5 + $0x134] ss:$8 sps:$4 sm:$0xff] (!%p348_p3)   ;;  %v2077_v15 = vld [vmem:[%s2695_s5 + $0x130] ss:$8 sps:$4 sm:$0xff] (!%p348_p3)   ;;  %v2078_v16 = vld [vmem:[%s2695_s5 + $0x44] ss:$8 sps:$4 sm:$0xff] (!%p348_p3)  }
   0xc   : > { %1355 = vmatpush1.bf16.msra.mxu1 (!%p348_p3), %v2064_v6  ;;  %v2080_v17 = vld [vmem:[%s2695_s5 + $0x144] ss:$8 sps:$4 sm:$0xff] (!%p348_p3)   ;;  %v2082_v18 = vld [vmem:[%s2695_s5 + $0x40] ss:$8 sps:$4 sm:$0xff] (!%p348_p3)   ;;  %v2084_v20 = vld [vmem:[%s2695_s5 + $0x54] ss:$8 sps:$4 sm:$0xff] (!%p348_p3)  }
   0xd   : > { %1408 = vmatpush1.bf16.msra.mxu0 (!%p348_p3), %v2065_v7  ;;  %1356 = vmatprep.subr.bf16.mxu1 (!%p348_p3), %v2066_v8  ;;  %v2083_v19 = vld [vmem:[%s2695_s5 + $0x140] ss:$8 sps:$4 sm:$0xff] (!%p348_p3)   ;;  %v2086_v21 = vld [vmem:[%s2695_s5 + $0x154] ss:$8 sps:$4 sm:$0xff] (!%p348_p3)   ;;  %v2088_v22 = vld [vmem:[%s2695_s5 + $0x50] ss:$8 sps:$4 sm:$0xff] (!%p348_p3)  }
   0xe   : > { %1409 = vmatprep.subr.bf16.mxu0 %v2068_v9  ;;  %v2089_v23 = vld [vmem:[%s2695_s5 + $0x150] ss:$8 sps:$4 sm:$0xff]   ;;  %v2090_v24 = vld [vmem:[%s2695_s5 + $0x64] ss:$8 sps:$4 sm:$0xff]   ;;  %v2094_v26 = vld [vmem:[%s2695_s5 + $0x60] ss:$8 sps:$4 sm:$0xff]  }
   0xf   : > { %v2092_v25 = vld [vmem:[%s2695_s5 + $0x164] ss:$8 sps:$4 sm:$0xff]   ;;  %v2095_v27 = vld [vmem:[%s2695_s5 + $0x160] ss:$8 sps:$4 sm:$0xff]   ;;  %v2096_v28 = vld [vmem:[%s2695_s5 + $0x74] ss:$8 sps:$4 sm:$0xff]  }
  0x10   : > { %1357 = vmatpush1.bf16.msra.mxu1 %v2070_v10  ;;  %v2098_v29 = vld [vmem:[%s2695_s5 + $0x174] ss:$8 sps:$4 sm:$0xff]   ;;  %v2100_v30 = vld [vmem:[%s2695_s5 + $0x70] ss:$8 sps:$4 sm:$0xff]   ;;  %v2102_v32 = vld [vmem:[%s2695_s5 + $0x84] ss:$8 sps:$4 sm:$0xff]  }
  0x11   : > { %1410 = vmatpush1.bf16.msra.mxu0 %v2071_v11  ;;  %1358 = vmatprep.subr.bf16.mxu1 %v2072_v12  ;;  %v2101_v31 = vld [vmem:[%s2695_s5 + $0x170] ss:$8 sps:$4 sm:$0xff]   ;;  %v2104_v33 = vld [vmem:[%s2695_s5 + $0x184] ss:$8 sps:$4 sm:$0xff]   ;;  %v2106_v34 = vld [vmem:[%s2695_s5 + $0x80] ss:$8 sps:$4 sm:$0xff]  }
  0x12   : > { %1411 = vmatprep.subr.bf16.mxu0 %v2074_v13  ;;  %v2107_v35 = vld [vmem:[%s2695_s5 + $0x180] ss:$8 sps:$4 sm:$0xff]   ;;  %v2108_v36 = vld [vmem:[%s2695_s5 + $0x94] ss:$8 sps:$4 sm:$0xff]   ;;  %v2222_v37 = vmov 1966171168  }
  0x13   : > { %v513_v38 = vunpack.c.l.s4 %v2222_v37  ;;  %v2110_v40 = vld [vmem:[%s2695_s5 + $0x194] ss:$8 sps:$4 sm:$0xff]   ;;  %v2112_v41 = vld [vmem:[%s2695_s5 + $0x90] ss:$8 sps:$4 sm:$0xff]   ;;  %v2114_v43 = vld [vmem:[%s2695_s5 + $0xa4] ss:$8 sps:$4 sm:$0xff]  }
  0x14   : > { %1359 = vmatpush1.bf16.msra.mxu1 %v2076_v14  ;;  %v2113_v42 = vld [vmem:[%s2695_s5 + $0x190] ss:$8 sps:$4 sm:$0xff]   ;;  %v516_v45 = vshrl.u32 %v515_v39, 7  ;;  %v2116_v46 = vld [vmem:[%s2695_s5 + $0x1a4] ss:$8 sps:$4 sm:$0xff]   ;;  %s2706_s26 = smov (!%p430_p4, %s2212_s26), 1 }
  0x15   : > { %1412 = vmatpush1.bf16.msra.mxu0 %v2077_v15  ;;  %1360 = vmatprep.subr.bf16.mxu1 %v2078_v16  ;;  %v514_v44 = vunpack.c.0.s8 %v513_v38  ;;  %v2118_v47 = vld [vmem:[%s2695_s5 + $0xa0] ss:$8 sps:$4 sm:$0xff]   ;;  %v2120_v49 = vld [vmem:[%s2695_s5 + $0xb4] ss:$8 sps:$4 sm:$0xff]   ;;  %v2124_v52 = vld [vmem:[%s2695_s5 + $0xb0] ss:$8 sps:$4 sm:$0xff]  }
  0x16   : > { %1413 = vmatprep.subr.bf16.mxu0 %v2080_v17  ;;  %v2119_v48 = vld [vmem:[%s2695_s5 + $0x1a0] ss:$8 sps:$4 sm:$0xff]   ;;  %v2122_v51 = vld [vmem:[%s2695_s5 + $0x1b4] ss:$8 sps:$4 sm:$0xff]   ;;  %s1972_s21 = sshll.u32 %s2706_s26, 5  ;;  %v531_v53 = vsub.s32 0, %v516_v45 }
  0x17   : > { %v2429_v50 = vsub.s32 %v514_v44, %v516_v45  ;;  %v2125_v54 = vld [vmem:[%s2695_s5 + $0x1b0] ss:$8 sps:$4 sm:$0xff]   ;;  %v1978_v55 = vld.sshfl [vmem:[%s2693_s3] sm:$0x11 pattern:$0x75316420]  ;;  %s2464_s16 = scalar_lea.vmem %s2690_s0, %s1972_s21  ;;  %s2663_s14 = scalar_lea.vmem %s2696_s6, %s1972_s21 }
  0x18   : > { %1361 = vmatpush1.bf16.msra.mxu1 %v2082_v18  ;;  %v1979_v56 = vld.sshfl [vmem:[%s2694_s4] sm:$0x11 pattern:$0x75316420]  ;;  %v511_v57 = vcombine.high %v1978_v55, %v1978_v55  ;;  %v2126_v59 = vld [vmem:[%s2695_s5 + $0xc4] ss:$8 sps:$4 sm:$0xff]  }
  0x19   : > { %1414 = vmatpush1.bf16.msra.mxu0 %v2083_v19  ;;  %1362 = vmatprep.subr.bf16.mxu1 %v2084_v20  ;;  %v518_v58 = vrot.slane %v1978_v55, %v2429_v50  ;;  %v2128_v60 = vld [vmem:[%s2695_s5 + $0x1c4] ss:$8 sps:$4 sm:$0xff]   ;;  %v558_v61 = vcombine.high %v1979_v56, %v1979_v56  ;;  %v565_v62 = vrot.slane %v1979_v56, %v2429_v50  ;;  %v2130_v1 = vld [vmem:[%s2695_s5 + $0xc0] ss:$8 sps:$4 sm:$0xff]   ;;  %v2132_v7 = vld [vmem:[%s2695_s5 + $0xd4] ss:$8 sps:$4 sm:$0xff]  }
  0x1a   : > { %1415 = vmatprep.subr.bf16.mxu0 %v2086_v21  ;;  %v525_v63 = vrot.slane %v511_v57, %v2429_v50  ;;  %v2131_v4 = vld [vmem:[%s2695_s5 + $0x1c0] ss:$8 sps:$4 sm:$0xff]   ;;  %v2134_v8 = vld [vmem:[%s2695_s5 + $0x1d4] ss:$8 sps:$4 sm:$0xff]   ;;  %v2136_v11 = vld [vmem:[%s2695_s5 + $0xd0] ss:$8 sps:$4 sm:$0xff]  }
  0x1b   : > { %v527_v0 = vpack.i.b16 %v518_v58, %v518_v58  ;;  %v572_v2 = vrot.slane %v558_v61, %v2429_v50  ;;  %v574_v3 = vpack.i.b16 %v565_v62, %v565_v62  ;;  %v499_v12 = vld [vmem:[%s2464_s16] sm:$0xff]  ;;  %v500_v14 = vld [vmem:[%s2464_s16 + $0x8] sm:$0xff]  ;;  %v2137_v16 = vld [vmem:[%s2695_s5 + $0x1d0] ss:$8 sps:$4 sm:$0xff]   ;;  %v2223_v18 = vmov 0   ;;  %s1862_s21 = sshll.u32 %s2706_s26, 1 }
  0x1c   : > { %1363 = vmatpush1.bf16.msra.mxu1 %v2088_v22  ;;  %v534_v6 = vpack.i.b16 %v525_v63, %v525_v63  ;;  %v641_v19 = vrot.slane %v2223_v18, %v2429_v50  ;;  %v2138_v20 = vld [vmem:[%s2695_s5 + $0xe4] ss:$8 sps:$4 sm:$0xff]   ;;  %vm681_vm0 = vsmask.f32 256  ;;  %vm716_vm1 = vcmask 1040384   ;;  %s486_s18 = scalar_lea.vmem %s2697_s7, %s1862_s21  ;;  %s494_s26 = scalar_lea.vmem %s2698_s8, %s1862_s21 }
  0x1d   : > { %1416 = vmatpush1.bf16.msra.mxu0 %v2089_v23  ;;  %1364 = vmatprep.subr.bf16.mxu1 %v2090_v24  ;;  %v532_v5 = vrot.slane %v527_v0, %v531_v53  ;;  %v579_v9 = vrot.slane %v574_v3, %v531_v53  ;;  %v581_v10 = vpack.i.b16 %v572_v2, %v572_v2  ;;  %v2140_v21 = vld [vmem:[%s2695_s5 + $0x1e4] ss:$8 sps:$4 sm:$0xff]   ;;  %vm717_vm2 = vmand %vm716_vm1, %vm681_vm0  ;;  %v2155_v56 = vld [vmem:[%s2695_s5 + $0x214] ss:$8 sps:$4 sm:$0xff]   ;;  %vm720_vm3 = vsmask.f32 7424 }
  0x1e   : > { %1417 = vmatprep.subr.bf16.mxu0 %v2092_v25  ;;  %v539_v13 = vrot.slane %v534_v6, %v531_v53  ;;  %v2142_v25 = vld [vmem:[%s2695_s5 + $0xe0] ss:$8 sps:$4 sm:$0xff]   ;;  %v2153_v2 = vld [vmem:[%s2695_s5 + $0x210] ss:$8 sps:$4 sm:$0xff]   ;;  %v2158_v3 = vld [vmem:[%s2695_s5 + $0x224] ss:$8 sps:$4 sm:$0xff]  }
  0x1f   : > { %v586_v15 = vrot.slane %v581_v10, %v531_v53  ;;  %vm768_vm4 = vcmask 1047552   ;;  %vm1577_vm6 = vcmp.lt.s32.totalorder %v515_v39, 256 }
  0x20   : > { %1365 = vmatpush1.bf16.msra.mxu1 %v2094_v26  ;;  %v1864_v17 = vcombine.low %v532_v5, %v539_v13  ;;  %v2143_v26 = vld [vmem:[%s2695_s5 + $0x1e0] ss:$8 sps:$4 sm:$0xff]   ;;  %v2161_v13 = vld [vmem:[%s2695_s5 + $0x234] ss:$8 sps:$4 sm:$0xff]   ;;  %vm2566_vm5 = vmand %vm768_vm4, %vm720_vm3 }
  0x21   : > { %1418 = vmatpush1.bf16.msra.mxu0 %v2095_v27  ;;  %1366 = vmatprep.subr.bf16.mxu1 %v2096_v28  ;;  %v1865_v22 = vcombine.low %v579_v9, %v586_v15 }
  0x22   : > { %1419 = vmatprep.subr.bf16.mxu0 %v2098_v29  ;;  %v546_v23 = vmul.bf16 %v1864_v17, %v499_v12  ;;  %v547_v24 = vmul.bf16 %v1864_v17, %v500_v14  ;;  %v642_v29 = vcombine.high %v641_v19, %v641_v19  ;;  %v2156_v12 = vld [vmem:[%s2695_s5 + $0x220] ss:$8 sps:$4 sm:$0xff]  }
  0x24   : > { %1367 = vmatpush1.bf16.msra.mxu1 %v2100_v30  ;;  %v593_v27 = vadd.bf16 %v1865_v22, %v546_v23  ;;  %v594_v28 = vadd.bf16 %v1865_v22, %v547_v24  ;;  %v2144_v30 = vld [vmem:[%s2695_s5 + $0xf4] ss:$8 sps:$4 sm:$0xff]   ;;  %v2513_v37 = vrot.slane %v642_v29, %v2429_v50  ;;  %v2164_v24 = vld [vmem:[%s2695_s5 + $0x244] ss:$8 sps:$4 sm:$0xff]  }
  0x25   : > { %1420 = vmatpush1.bf16.msra.mxu0 %v2101_v31  ;;  %1368 = vmatprep.subr.bf16.mxu1 %v2102_v32  ;;  %v2146_v31 = vld [vmem:[%s2695_s5 + $0x1f4] ss:$8 sps:$4 sm:$0xff]  }
  0x26   : > { %1421 = vmatprep.subr.bf16.mxu0 %v2104_v33  ;;  %v597_v32 = vmax.bf16 %v2223_v18, %v593_v27  ;;  %v598_v33 = vmax.bf16 %v2223_v18, %v594_v28  ;;  %v661_v53 = vshrl.u32 %v2513_v37, 16  ;;  %v2162_v28 = vld [vmem:[%s2695_s5 + $0x240] ss:$8 sps:$4 sm:$0xff]   ;;  %v2167_v29 = vld [vmem:[%s2695_s5 + $0x254] ss:$8 sps:$4 sm:$0xff]  }
  0x28   : > { %1369 = vmatpush1.bf16.msra.mxu1 %v2106_v34  ;;  %v2148_v34 = vld [vmem:[%s2695_s5 + $0xf0] ss:$8 sps:$4 sm:$0xff]   ;;  %v1867_v38 = vcombine.high %v597_v32, %v598_v33 }
  0x29   : > { %1422 = vmatpush1.bf16.msra.mxu0 %v2107_v35  ;;  %1370 = vmatprep.subr.bf16.mxu1 %v2108_v36  ;;  %v2507_v35 = vrot.slane %v641_v19, %v2429_v50  ;;  %v2149_v36 = vld [vmem:[%s2695_s5 + $0x1f0] ss:$8 sps:$4 sm:$0xff]  }
  0x2a   : > { %1423 = vmatprep.subr.bf16.mxu0 %v2110_v40  ;;  %v2515_v40 = vcombine.low %v597_v32, %v598_v33  ;;  %v693_v44 = vshll.u32 %v1867_v38, 16  ;;  %1437 = vmatprep.mubr.bf16.mxu0 %v1867_v38  ;;  %v2168_v32 = vld [vmem:[%s2695_s5 + $0x260] ss:$8 sps:$4 sm:$0xff]   ;;  %v2173_v33 = vld [vmem:[%s2695_s5 + $0x274] ss:$8 sps:$4 sm:$0xff]  }
  0x2c   : > { %1371 = vmatpush1.bf16.msra.mxu1 %v2112_v41  ;;  %v2152_v41 = vld [vmem:[%s2695_s5 + $0x204] ss:$8 sps:$4 sm:$0xff]   ;;  %v683_v45 = vshrl.u32 %v2515_v40, 16  ;;  %v725_v61 = vrot.slane %v693_v44, 1 }
  0x2d   : > { %1424 = vmatpush1.bf16.msra.mxu0 %v2113_v42  ;;  %1372 = vmatprep.subr.bf16.mxu1 %v2114_v43  ;;  %v501_v42 = vld [vmem:[%s2464_s16 + $0x10] sm:$0xff]  ;;  %v690_v43 = vshrl.u32 %v1867_v38, 16 }
  0x2e   : > { %1425 = vmatprep.subr.bf16.mxu0 %v2116_v46  ;;  %v686_v46 = vshll.u32 %v2515_v40, 16  ;;  %v685_v55 = vrot.slane %v683_v45, 7  ;;  %v2179_v38 = vld [vmem:[%s2695_s5 + $0x294] ss:$8 sps:$4 sm:$0xff]  }
  0x2f   : > { %v726_v6 = vor.u32 %v725_v61, %v690_v43 }
  0x30   : > { %1373 = vmatpush1.bf16.msra.mxu1 %v2118_v47  ;;  %v502_v47 = vld [vmem:[%s2464_s16 + $0x18] sm:$0xff] }
  0x31   : > { %1426 = vmatpush1.bf16.msra.mxu0 %v2119_v48  ;;  %1374 = vmatprep.subr.bf16.mxu1 %v2120_v49  ;;  %v2150_v48 = vld [vmem:[%s2695_s5 + $0x200] ss:$8 sps:$4 sm:$0xff]   ;;  %v658_v49 = vshrl.u32 %v2507_v35, 16 }
  0x32   : > { %1427 = vmatprep.subr.bf16.mxu0 %v2122_v51  ;;  %v548_v51 = vmul.bf16 %v1864_v17, %v501_v42  ;;  %v2182_v42 = vld [vmem:[%s2695_s5 + $0x2a4] ss:$8 sps:$4 sm:$0xff]  }
  0x34   : > { %1375 = vmatpush1.bf16.msra.mxu1 %v2124_v52  ;;  %v549_v52 = vmul.bf16 %v1864_v17, %v502_v47  ;;  %v595_v57 = vadd.bf16 %v1865_v22, %v548_v51  ;;  %v2183_v47 = vld [vmem:[%s2695_s5 + $0x2b0] ss:$8 sps:$4 sm:$0xff]   ;;  %v2191_v51 = vld [vmem:[%s2695_s5 + $0x2d4] ss:$8 sps:$4 sm:$0xff]  }
  0x35   : > { %1428 = vmatpush1.bf16.msra.mxu0 %v2125_v54  ;;  %1376 = vmatprep.subr.bf16.mxu1 %v2126_v59  ;;  %v692_v54 = vrot.slane %v690_v43, 7  ;;  %v2180_v43 = vld [vmem:[%s2695_s5 + $0x2a0] ss:$8 sps:$4 sm:$0xff]  }
  0x36   : > { %1429 = vmatprep.subr.bf16.mxu0 %v2128_v60  ;;  %v596_v58 = vadd.bf16 %v1865_v22, %v549_v52  ;;  %v688_v60 = vor.u32 %v686_v46, %v685_v55  ;;  %v599_v62 = vmax.bf16 %v2223_v18, %v595_v57  ;;  %v2189_v52 = vld [vmem:[%s2695_s5 + $0x2d0] ss:$8 sps:$4 sm:$0xff]   ;;  %v759_v57 = vshll.u32 %v2507_v35, 16 }
  0x37   : > { %v695_v59 = vor.u32 %v693_v44, %v692_v54  ;;  %v2185_v44 = vld [vmem:[%s2695_s5 + $0x2b4] ss:$8 sps:$4 sm:$0xff]  }
  0x38   : > { %1377 = vmatpush1.bf16.msra.mxu1 %v2130_v1  ;;  %v600_v63 = vmax.bf16 %v2223_v18, %v596_v58  ;;  %v718_v1 = vsel %vm717_vm2, %v658_v49, %v688_v60  ;;  %v2186_v49 = vld [vmem:[%s2695_s5 + $0x2c0] ss:$8 sps:$4 sm:$0xff]   ;;  %v761_v61 = vrot.slane %v759_v57, 1 }
  0x39   : > { %1430 = vmatpush1.bf16.msra.mxu0 %v2131_v4  ;;  %1378 = vmatprep.subr.bf16.mxu1 %v2132_v7  ;;  %v719_v0 = vsel %vm717_vm2, %v661_v53, %v695_v59  ;;  %v763_v7 = vshll.u32 %v2513_v37, 16  ;;  %v2174_v37 = vld [vmem:[%s2695_s5 + $0x280] ss:$8 sps:$4 sm:$0xff]   ;;  %v2194_v53 = vld [vmem:[%s2695_s5 + $0x2e4] ss:$8 sps:$4 sm:$0xff]  }
  0x3a   : > { %1431 = vmatprep.subr.bf16.mxu0 %v2134_v8  ;;  %1384 = vmatprep.mubr.bf16.mxu1 %v719_v0  ;;  %v1869_v4 = vcombine.high %v599_v62, %v600_v63  ;;  %v2545_v5 = vcombine.low %v599_v62, %v600_v63 }
  0x3c   : > { %1379 = vmatpush1.bf16.msra.mxu1 %v2136_v11  ;;  %v705_v8 = vshrl.u32 %v1869_v4, 16  ;;  %v708_v9 = vshll.u32 %v1869_v4, 16  ;;  %v697_v10 = vshrl.u32 %v2545_v5, 16  ;;  %v700_v11 = vshll.u32 %v2545_v5, 16 }
  0x3d   : > { %1432 = vmatpush1.bf16.msra.mxu0 %v2137_v16  ;;  %1380 = vmatprep.subr.bf16.mxu1 %v2138_v20  ;;  %v765_v20 = vrot.slane %v763_v7, 1 }
  0x3e   : > { %1433 = vmatprep.subr.bf16.mxu0 %v2140_v21  ;;  %v707_v14 = vrot.slane %v705_v8, 7  ;;  %v699_v15 = vrot.slane %v697_v10, 7  ;;  %v727_v16 = vrot.slane %v708_v9, 1  ;;  %v2159_v21 = vld [vmem:[%s2695_s5 + $0x230] ss:$8 sps:$4 sm:$0xff]   ;;  %v723_v58 = vrot.slane %v700_v11, 1 }
  0x40   : > { %1381 = vmatpush1.bf16.msra.mxu1 %v2142_v25  ;;  %v710_v17 = vor.u32 %v708_v9, %v707_v14  ;;  %v702_v18 = vor.u32 %v700_v11, %v699_v15  ;;  %v728_v19 = vsel %vm720_vm3, %v726_v6, %v727_v16  ;;  %v730_v22 = vor.u32 %v727_v16, %v705_v8 }
  0x41   : > { %1434 = vmatpush1.bf16.msra.mxu0 %v2143_v26  ;;  %1382 = vmatprep.subr.bf16.mxu1 %v2144_v30  ;;  %v2165_v30 = vld [vmem:[%s2695_s5 + $0x250] ss:$8 sps:$4 sm:$0xff]   ;;  %v729_v60 = vor.u32 %v723_v58, %v697_v10 }
  0x42   : > { %1435 = vmatprep.subr.bf16.mxu0 %v2146_v31  ;;  %v711_v25 = vsel %vm681_vm0, %v692_v54, %v710_v17  ;;  %v703_v26 = vsel %vm681_vm0, %v685_v55, %v702_v18  ;;  %v771_v27 = vsel %vm2566_vm5, %v730_v22, %v765_v20  ;;  %v2170_v31 = vld [vmem:[%s2695_s5 + $0x264] ss:$8 sps:$4 sm:$0xff]   ;;  %v721_v54 = vrot.slane %v686_v46, 1  ;;  %v2192_v55 = vld [vmem:[%s2695_s5 + $0x2e0] ss:$8 sps:$4 sm:$0xff]  }
  0x43   : > { %v2195_v46 = vld [vmem:[%s2695_s5 + $0x2f0] ss:$8 sps:$4 sm:$0xff]   ;;  %v770_v62 = vsel %vm2566_vm5, %v729_v60, %v761_v61 }
  0x44   : > { %1383 = vmatpush1.bf16.msra.mxu1 %v2148_v34  ;;  %v2171_v34 = vld [vmem:[%s2695_s5 + $0x270] ss:$8 sps:$4 sm:$0xff]   ;;  %v722_v59 = vor.u32 %v721_v54, %v683_v45 }
  0x45   : > { %1436 = vmatpush1.bf16.msra.mxu0 %v2149_v36  ;;  %1980 = vmatprep.subr.bf16.mxu1 %v2152_v41  ;;  %v2176_v36 = vld [vmem:[%s2695_s5 + $0x284] ss:$8 sps:$4 sm:$0xff]  }
  0x46   : > { %1458 = vmatprep.subr.bf16.mxu0 %v2152_v41  ;;  %v2177_v41 = vld [vmem:[%s2695_s5 + $0x290] ss:$8 sps:$4 sm:$0xff]   ;;  %v724_v35 = vsel %vm720_vm3, %v722_v59, %v723_v58 }
  0x47   : > { %1385 = vmatmul.mubr.bf16.vlgmr.msra.gmra.mrb[0].mxu1 %v718_v1 }
  0x48   : > { %1438 = vmatmul.mubr.bf16.vlgmr.msra.gmra.mrb[0].mxu0 %v2515_v40  ;;  %1996 = vmatpush1.bf16.msra.mxu1 %v2150_v48 }
  0x49   : > { %1459 = vmatpush1.bf16.msra.mxu0 %v2150_v48  ;;  %1447 = vmatprep.mubr.bf16.mxu0 %v1869_v4  ;;  %v2188_v48 = vld [vmem:[%s2695_s5 + $0x2c4] ss:$8 sps:$4 sm:$0xff]  }
  0x4a   : > { %1460 = vmatprep.subr.bf16.mxu0 %v2155_v56  ;;  %1981 = vmatprep.subr.bf16.mxu1 %v2155_v56  ;;  %v2197_v56 = vld [vmem:[%s2695_s5 + $0x2f4] ss:$8 sps:$4 sm:$0xff]  }
  0x4b   : > { %1394 = vmatprep.mubr.bf16.mxu1 %v711_v25 }
  0x4c   : > { %1997 = vmatpush1.bf16.msra.mxu1 %v2153_v2 }
  0x4d   : > { %1461 = vmatpush1.bf16.msra.mxu0 %v2153_v2  ;;  %1982 = vmatprep.subr.bf16.mxu1 %v2158_v3 }
  0x4e   : > { %1462 = vmatprep.subr.bf16.mxu0 %v2158_v3 }
  0x4f   : > { %1395 = vmatmul.mubr.bf16.gmra.mrb[4].mxu1 %v703_v26 }
  0x50   : > { %1448 = vmatmul.mubr.bf16.gmra.mrb[4].mxu0 %v2545_v5  ;;  %1998 = vmatpush1.bf16.msra.mxu1 %v2156_v12 }
  0x51   : > { %1463 = vmatpush1.bf16.msra.mxu0 %v2156_v12  ;;  %1490 = vmatprep.mubr.bf16.mxu0 %v728_v19 }
  0x52   : > { %1464 = vmatprep.subr.bf16.mxu0 %v2161_v13  ;;  %1983 = vmatprep.subr.bf16.mxu1 %v2161_v13 }
  0x53   : > { %1500 = vmatprep.mubr.bf16.mxu1 %v771_v27 }
  0x54   : > { %1999 = vmatpush1.bf16.msra.mxu1 %v2159_v21 }
  0x55   : > { %1465 = vmatpush1.bf16.msra.mxu0 %v2159_v21  ;;  %1984 = vmatprep.subr.bf16.mxu1 %v2164_v24 }
  0x56   : > { %1466 = vmatprep.subr.bf16.mxu0 %v2164_v24 }
  0x58   : > { %2000 = vmatpush1.bf16.msra.mxu1 %v2162_v28 }
  0x59   : > { %1467 = vmatpush1.bf16.msra.mxu0 %v2162_v28  ;;  %1985 = vmatprep.subr.bf16.mxu1 %v2167_v29 }
  0x5a   : > { %1468 = vmatprep.subr.bf16.mxu0 %v2167_v29 }
  0x5c   : > { %2001 = vmatpush1.bf16.msra.mxu1 %v2165_v30 }
  0x5d   : > { %1469 = vmatpush1.bf16.msra.mxu0 %v2165_v30  ;;  %1986 = vmatprep.subr.bf16.mxu1 %v2170_v31 }
  0x5e   : > { %1470 = vmatprep.subr.bf16.mxu0 %v2170_v31 }
  0x60   : > { %2002 = vmatpush1.bf16.msra.mxu1 %v2168_v32 }
  0x61   : > { %1471 = vmatpush1.bf16.msra.mxu0 %v2168_v32  ;;  %1987 = vmatprep.subr.bf16.mxu1 %v2173_v33 }
  0x62   : > { %1472 = vmatprep.subr.bf16.mxu0 %v2173_v33 }
  0x64   : > { %2003 = vmatpush1.bf16.msra.mxu1 %v2171_v34 }
  0x65   : > { %1473 = vmatpush1.bf16.msra.mxu0 %v2171_v34  ;;  %1988 = vmatprep.subr.bf16.mxu1 %v2176_v36 }
  0x66   : > { %1474 = vmatprep.subr.bf16.mxu0 %v2176_v36 }
  0x68   : > { %2004 = vmatpush1.bf16.msra.mxu1 %v2174_v37 }
  0x69   : > { %1475 = vmatpush1.bf16.msra.mxu0 %v2174_v37  ;;  %1989 = vmatprep.subr.bf16.mxu1 %v2179_v38 }
  0x6a   : > { %1476 = vmatprep.subr.bf16.mxu0 %v2179_v38 }
  0x6c   : > { %2005 = vmatpush1.bf16.msra.mxu1 %v2177_v41 }
  0x6d   : > { %1477 = vmatpush1.bf16.msra.mxu0 %v2177_v41  ;;  %1990 = vmatprep.subr.bf16.mxu1 %v2182_v42 }
  0x6e   : > { %1478 = vmatprep.subr.bf16.mxu0 %v2182_v42 }
  0x70   : > { %2006 = vmatpush1.bf16.msra.mxu1 %v2180_v43 }
  0x71   : > { %1479 = vmatpush1.bf16.msra.mxu0 %v2180_v43  ;;  %1991 = vmatprep.subr.bf16.mxu1 %v2185_v44 }
  0x72   : > { %1480 = vmatprep.subr.bf16.mxu0 %v2185_v44 }
  0x74   : > { %2007 = vmatpush1.bf16.msra.mxu1 %v2183_v47 }
  0x75   : > { %1481 = vmatpush1.bf16.msra.mxu0 %v2183_v47  ;;  %1992 = vmatprep.subr.bf16.mxu1 %v2188_v48 }
  0x76   : > { %1482 = vmatprep.subr.bf16.mxu0 %v2188_v48 }
  0x78   : > { %2008 = vmatpush1.bf16.msra.mxu1 %v2186_v49 }
  0x79   : > { %1483 = vmatpush1.bf16.msra.mxu0 %v2186_v49  ;;  %1993 = vmatprep.subr.bf16.mxu1 %v2191_v51 }
  0x7a   : > { %1484 = vmatprep.subr.bf16.mxu0 %v2191_v51 }
  0x7c   : > { %2009 = vmatpush1.bf16.msra.mxu1 %v2189_v52 }
  0x7d   : > { %1485 = vmatpush1.bf16.msra.mxu0 %v2189_v52  ;;  %1994 = vmatprep.subr.bf16.mxu1 %v2194_v53 }
  0x7e   : > { %1486 = vmatprep.subr.bf16.mxu0 %v2194_v53 }
  0x80   : > { %2010 = vmatpush1.bf16.msra.mxu1 %v2192_v55 }
  0x81   : > { %1487 = vmatpush1.bf16.msra.mxu0 %v2192_v55  ;;  %1995 = vmatprep.subr.bf16.mxu1 %v2197_v56 }
  0x82   : > { %1488 = vmatprep.subr.bf16.mxu0 %v2197_v56 }
  0x84   : > { %2011 = vmatpush1.bf16.msra.mxu1 %v2195_v46 }
  0x85   : > { %1489 = vmatpush1.bf16.msra.mxu0 %v2195_v46 }
  0x87   : > { %1501 = vmatmul.mubr.bf16.vlgmr.msra.gmra.mrb[8].mxu1 %v770_v62 }
  0x88   : > { %1491 = vmatmul.mubr.bf16.vlgmr.msra.gmra.mrb[0].mxu0 %v724_v35 }
 0x11a   : > { %v1386_v63 = vpop.f32.mrb[0].mxu1 }
 0x11b   : > { %v1388_v0 = vpop.f32.mrb[1].mxu1 }
 0x11c   : > { %v1390_v40 = vpop.f32.mrb[2].mxu1 }
 0x11d   : > { %v1392_v45 = vpop.f32.mrb[3].mxu1 }
 0x122   : > { %v1396_v5 = vpop.f32.mrb[4].mxu1 }
 0x123   : > { %v1449_v1 = vpop.f32.mrb[4].mxu0  ;;  %v1398_v7 = vpop.f32.mrb[5].mxu1 }
 0x124   : > { %v1451_v2 = vpop.f32.mrb[5].mxu0  ;;  %v1450_v6 = vadd.f32 %v1449_v1, %v1396_v5  ;;  %v1400_v9 = vpop.f32.mrb[6].mxu1 }
 0x125   : > { %v1453_v3 = vpop.f32.mrb[6].mxu0  ;;  %v1452_v8 = vadd.f32 %v1451_v2, %v1398_v7  ;;  %v1402_v11 = vpop.f32.mrb[7].mxu1 }
 0x126   : > { %v1455_v4 = vpop.f32.mrb[7].mxu0  ;;  %v1454_v10 = vadd.f32 %v1453_v3, %v1400_v9 }
 0x127   : > { %v1456_v12 = vadd.f32 %v1455_v4, %v1402_v11 }
 0x15a   : > { %v1502_v18 = vpop.f32.mrb[8].mxu1 }
 0x15b   : > { %v1492_v13 = vpop.f32.mrb[0].mxu0  ;;  %v1503_v21 = vadd.f32 %v1502_v18, %v1450_v6  ;;  %v1504_v23 = vpop.f32.mrb[9].mxu1 }
 0x15c   : > { %v2012_v14 = vadd.f32 %v1492_v13, %v1386_v63  ;;  %v1494_v15 = vpop.f32.mrb[1].mxu0  ;;  %v1505_v26 = vadd.f32 %v1504_v23, %v1452_v8  ;;  %v1506_v29 = vpop.f32.mrb[10].mxu1 }
 0x15d   : > { %v2013_v16 = vadd.f32 %v1494_v15, %v1388_v0  ;;  %v1496_v17 = vpop.f32.mrb[2].mxu0  ;;  %v1507_v30 = vadd.f32 %v1506_v29, %v1454_v10  ;;  %v1508_v33 = vpop.f32.mrb[11].mxu1  ;;  %v1584_v34 = vmul.f32 %v1503_v21, %v1503_v21 }
 0x15e   : > { %v2014_v19 = vadd.f32 %v1496_v17, %v1390_v40  ;;  %v1498_v20 = vpop.f32.mrb[3].mxu0  ;;  %v1580_v25 = vmul.f32 %v2012_v14, %v2012_v14  ;;  %v1976_v36 = vpack.c.bf16 %v1505_v26, %v1503_v21  ;;  %v1509_v43 = vadd.f32 %v1508_v33, %v1456_v12 }
 0x15f   : > { %v1974_v22 = vpack.c.bf16 %v2013_v16, %v2012_v14  ;;  %v2015_v24 = vadd.f32 %v1498_v20, %v1392_v45  ;;  %v1581_v41 = vmul.f32 %v2013_v16, %v2013_v16  ;;  %v1586_v48 = vmul.f32 %v1507_v30, %v1507_v30 }
 0x160   : > { %v1539_v27 = vadd.f32 %v2014_v19, %v2012_v14  ;;  %v1582_v28 = vmul.f32 %v2014_v19, %v2014_v19  ;;  %1537 = vst [vmem:[%s2663_s14 + $0x10] sm:$0xff] %v1976_v36  ;;  %v1585_v51 = vmul.f32 %v1505_v26, %v1505_v26  ;;  %v1977_v53 = vpack.c.bf16 %v1509_v43, %v1507_v30 }
 0x161   : > { %1535 = vst [vmem:[%s2663_s14] sm:$0xff] %v1974_v22  ;;  %v1975_v31 = vpack.c.bf16 %v2015_v24, %v2014_v19  ;;  %v1548_v32 = vadd.f32 %v2015_v24, %v2013_v16  ;;  %v1583_v42 = vmul.f32 %v2015_v24, %v2015_v24  ;;  %v1587_v58 = vmul.f32 %v1509_v43, %v1509_v43 }
 0x162   : > { %v1588_v37 = vadd.f32 %v1582_v28, %v1580_v25  ;;  %v1540_v38 = vadd.f32 %v1539_v27, %v1503_v21  ;;  %1538 = vst [vmem:[%s2663_s14 + $0x18] sm:$0xff] %v1977_v53 }
 0x163   : > { %1536 = vst [vmem:[%s2663_s14 + $0x8] sm:$0xff] %v1975_v31  ;;  %v1549_v44 = vadd.f32 %v1548_v32, %v1505_v26  ;;  %v1597_v52 = vadd.f32 %v1583_v42, %v1581_v41 }
 0x164   : > { %v1541_v47 = vadd.f32 %v1540_v38, %v1507_v30  ;;  %v1589_v49 = vadd.f32 %v1588_v37, %v1584_v34 }
 0x165   : > { %v1550_v54 = vadd.f32 %v1549_v44, %v1509_v43  ;;  %v1598_v46 = vadd.f32 %v1597_v52, %v1585_v51 }
 0x166   : > { %v1542_v55 = vrot.slane %v1541_v47, 4  ;;  %v1590_v56 = vadd.f32 %v1589_v49, %v1586_v48 }
 0x167   : > { %v1551_v57 = vrot.slane %v1550_v54, 4  ;;  %v1599_v35 = vadd.f32 %v1598_v46, %v1587_v58 }
 0x168   : > { %v1543_v59 = vadd.f32 %v1542_v55, %v1541_v47  ;;  %v1591_v60 = vrot.slane %v1590_v56, 4 }
 0x169   : > { %v1552_v61 = vadd.f32 %v1551_v57, %v1550_v54  ;;  %v1600_v40 = vrot.slane %v1599_v35, 4 }
 0x16a   : > { %v1544_v62 = vrot.slane %v1543_v59, 2  ;;  %v1592_v63 = vadd.f32 %v1591_v60, %v1590_v56 }
 0x16b   : > { %v1553_v0 = vrot.slane %v1552_v61, 2  ;;  %v1601_v3 = vadd.f32 %v1600_v40, %v1599_v35 }
 0x16c   : > { %v1545_v45 = vadd.f32 %v1544_v62, %v1543_v59  ;;  %v1593_v1 = vrot.slane %v1592_v63, 2 }
 0x16d   : > { %v1554_v2 = vadd.f32 %v1553_v0, %v1552_v61  ;;  %v1602_v7 = vrot.slane %v1601_v3, 2 }
 0x16e   : > { %v1546_v4 = vrot.slane %v1545_v45, 1  ;;  %v1594_v5 = vadd.f32 %v1593_v1, %v1592_v63 }
 0x16f   : > { %v1555_v6 = vrot.slane %v1554_v2, 1  ;;  %v1603_v11 = vadd.f32 %v1602_v7, %v1601_v3 }
 0x170   : > { %v1547_v8 = vadd.f32 %v1546_v4, %v1545_v45  ;;  %v1595_v9 = vrot.slane %v1594_v5, 1 }
 0x171   : > { %v1556_v10 = vadd.f32 %v1555_v6, %v1554_v2  ;;  %v1604_v14 = vrot.slane %v1603_v11, 1 }
 0x172   : > { %v1596_v12 = vadd.f32 %v1595_v9, %v1594_v5 }
 0x173   : > { %v1559_v13 = vcombine.low %v1547_v8, %v1556_v10  ;;  %v1605_v16 = vadd.f32 %v1604_v14, %v1603_v11 }
 0x175   : > { %v1566_v15 = vrot.slane %v1559_v13, %v2429_v50  ;;  %v1608_v18 = vcombine.low %v1596_v12, %v1605_v16 }
 0x177   : > { %v1573_v17 = vrot.slane %v1566_v15, %v2429_v50  ;;  %v1615_v19 = vrot.slane %v1608_v18, %v2429_v50 }
 0x179   : > { %1579 = vst.msk [vmem:[%s486_s18] sm:$0x3] %vm1577_vm6, %v1573_v17  ;;  %v1622_v20 = vrot.slane %v1615_v19, %v2429_v50 }
 0x17b   : > { %1624 = vst.msk [vmem:[%s494_s26] sm:$0x3] %vm1577_vm6, %v1622_v20 }
 0x17c PF: > { %s19_s27 = sadd.s32 1, %s2220_s27   ;;  %s2701_s26 = smov %s2216_s2 }
 0x17d   : > { %p16_p5 = scmp.ge.s32.totalorder %s19_s27, 4   ;;  %s2702_s2 = smov %s2704_s28 }
 0x17f   :  { %18 = sbr.rel (!%p16_p5) target bundleno = 2 (0x2), region = 104 }

</bundles_post_ra>
